<compile_context>
chip_gen: v5e
topology: v5e:2x2
jax: 0.10.0
libtpu: 0.0.40
codegen_flags: <defaults>
</compile_context>

<pallas_src>
import jax
import jax.numpy as jnp
import numpy as np
from jax.experimental import pallas as pl
from jax.experimental.pallas import tpu as pltpu


def _make_dsb_kernel(OH, OW, Cin, Cout):
    """PReLU -> conv3x3(s2) -> PReLU -> conv3x3(s1), one whole image per grid step."""
    M = OH * OW

    def kernel(xp_ref, w1_ref, b1_ref, a1_ref, w2_ref, b2_ref, a2_ref,
               o_ref, ypad_ref):
        a1 = a1_ref[...].reshape(1, 1, Cin)                # (1,1,Cin) for 3-D broadcast
        a2 = a2_ref[...]                                   # (1, Cout)

        # -- conv #1 (stride 2): loop over the 4 stride phases.  PReLU #1 is applied
        #    once per full phase plane (4x) instead of per tap window (9x).
        acc = jnp.zeros((M, Cout), jnp.float32)
        for rh in range(2):
            for rw in range(2):
                plane = xp_ref[0, rh * 2 + rw]             # (Hp, Wp, Cin) f32
                plane = jnp.where(plane > 0, plane, a1 * plane)   # fused PReLU #1
                for kh in range(rh, 3, 2):                 # taps using this phase
                    qh = kh // 2
                    for kw in range(rw, 3, 2):
                        qw = kw // 2
                        win = plane[qh:qh + OH, qw:qw + OW, :].reshape(M, Cin)
                        acc = acc + jnp.dot(win.astype(jnp.bfloat16),
                                            w1_ref[kh * 3 + kw],
                                            preferred_element_type=jnp.float32)
        y = acc + b1_ref[...]
        y = jnp.where(y > 0, y, a2 * y)                    # fused PReLU #2

        # -- padded intermediate in VMEM scratch: zero only the 1-px border, the
        #    interior is fully overwritten every grid step.
        ypad_ref[0:1, :, :] = jnp.zeros((1, OW + 2, Cout), jnp.float32)
        ypad_ref[OH + 1:OH + 2, :, :] = jnp.zeros((1, OW + 2, Cout), jnp.float32)
        ypad_ref[:, 0:1, :] = jnp.zeros((OH + 2, 1, Cout), jnp.float32)
        ypad_ref[:, OW + 1:OW + 2, :] = jnp.zeros((OH + 2, 1, Cout), jnp.float32)
        ypad_ref[1:OH + 1, 1:OW + 1, :] = y.reshape(OH, OW, Cout)

        # -- conv #2 (stride 1): 9 shifted windows of the padded scratch.
        acc2 = jnp.zeros((M, Cout), jnp.float32)
        for kh in range(3):
            for kw in range(3):
                win = ypad_ref[kh:kh + OH, kw:kw + OW, :]  # (OH,OW,Cout) f32
                win = win.reshape(M, Cout).astype(jnp.bfloat16)
                acc2 = acc2 + jnp.dot(win, w2_ref[kh * 3 + kw],
                                      preferred_element_type=jnp.float32)
        o_ref[...] = (acc2 + b2_ref[...]).reshape(1, OH, OW, Cout)

    return kernel


@jax.jit
def downsampling_block(x_nchw, params):
    """DownSamplingBlock forward. x: (N, Cin, H, W) f32 -> (N, Cout, H//2, W//2) f32."""
    w1, b1, a1 = params["w1"], params["b1"], params["alpha1"]
    w2, b2, a2 = params["w2"], params["b2"], params["alpha2"]
    kh, kw, Cin, Cout = w1.shape
    N, _, H, W = x_nchw.shape
    assert (kh, kw) == (3, 3) and H % 2 == 0 and W % 2 == 0
    OH, OW = H // 2, W // 2
    Hp, Wp = OH + 1, OW + 1                       # = (H+2)//2, (W+2)//2

    # NCHW -> NHWC, conv padding=1, stride-2 space-to-depth phase split.
    x = jnp.transpose(x_nchw, (0, 2, 3, 1)).astype(jnp.float32)
    xpad = jnp.pad(x, ((0, 0), (1, 1), (1, 1), (0, 0)))
    xp = (xpad.reshape(N, Hp, 2, Wp, 2, Cin)
              .transpose(0, 2, 4, 1, 3, 5)
              .reshape(N, 4, Hp, Wp, Cin))        # xp[n, r*2+s, i, j] = xpad[n, 2i+r, 2j+s]

    w1k = w1.reshape(9, Cin, Cout).astype(jnp.bfloat16)
    w2k = w2.reshape(9, Cout, Cout).astype(jnp.bfloat16)
    b1k = b1.reshape(1, Cout).astype(jnp.float32)
    b2k = b2.reshape(1, Cout).astype(jnp.float32)
    # nn.PReLU(): learnable alpha (single scalar by default, per-channel also accepted).
    a1k = jnp.broadcast_to(jnp.ravel(a1).astype(jnp.float32), (Cin,)).reshape(1, Cin)
    a2k = jnp.broadcast_to(jnp.ravel(a2).astype(jnp.float32), (Cout,)).reshape(1, Cout)

    flops = 2 * 9 * N * OH * OW * (Cin * Cout + Cout * Cout)
    bytes_accessed = int(xp.size * 4 + N * OH * OW * Cout * 4
                         + (w1k.size + w2k.size) * 2
                         + (b1k.size + b2k.size + a1k.size + a2k.size) * 4)
    cost = pl.CostEstimate(flops=flops, transcendentals=0, bytes_accessed=bytes_accessed)

    out = pl.pallas_call(
        _make_dsb_kernel(OH, OW, Cin, Cout),
        out_shape=jax.ShapeDtypeStruct((N, OH, OW, Cout), jnp.float32),
        grid=(N,),
        in_specs=[
            pl.BlockSpec((1, 4, Hp, Wp, Cin), lambda n: (n, 0, 0, 0, 0)),
            pl.BlockSpec((9, Cin, Cout), lambda n: (0, 0, 0)),
            pl.BlockSpec((1, Cout), lambda n: (0, 0)),
            pl.BlockSpec((1, Cin), lambda n: (0, 0)),
            pl.BlockSpec((9, Cout, Cout), lambda n: (0, 0, 0)),
            pl.BlockSpec((1, Cout), lambda n: (0, 0)),
            pl.BlockSpec((1, Cout), lambda n: (0, 0)),
        ],
        out_specs=pl.BlockSpec((1, OH, OW, Cout), lambda n: (n, 0, 0, 0)),
        scratch_shapes=[pltpu.VMEM((OH + 2, OW + 2, Cout), jnp.float32)],
        compiler_params=pltpu.CompilerParams(
            dimension_semantics=("parallel",),
            vmem_limit_bytes=64 * 1024 * 1024),
        cost_estimate=cost,
    )(xp, w1k, b1k, a1k, w2k, b2k, a2k)

    return jnp.transpose(out, (0, 3, 1, 2))


def downsampling_block_reference(x_nchw, params):
    """Plain-JAX f32 reference of the same forward pass (for correctness check)."""
    x = jnp.transpose(x_nchw, (0, 2, 3, 1)).astype(jnp.float32)
    a1 = jnp.ravel(params["alpha1"]).astype(jnp.float32)
    a2 = jnp.ravel(params["alpha2"]).astype(jnp.float32)
    x = jnp.where(x > 0, x, a1 * x)
    y = jax.lax.conv_general_dilated(
        x, params["w1"].astype(jnp.float32), window_strides=(2, 2),
        padding=((1, 1), (1, 1)), dimension_numbers=("NHWC", "HWIO", "NHWC"),
        precision=jax.lax.Precision.HIGHEST) + params["b1"].astype(jnp.float32)
    y = jnp.where(y > 0, y, a2 * y)
    z = jax.lax.conv_general_dilated(
        y, params["w2"].astype(jnp.float32), window_strides=(1, 1),
        padding=((1, 1), (1, 1)), dimension_numbers=("NHWC", "HWIO", "NHWC"),
        precision=jax.lax.Precision.HIGHEST) + params["b2"].astype(jnp.float32)
    return jnp.transpose(z, (0, 3, 1, 2))


def build_params(key, ch_in, ch_out):
    k1, k2, k3, k4 = jax.random.split(key, 4)
    s1 = 1.0 / (9 * ch_in) ** 0.5
    s2 = 1.0 / (9 * ch_out) ** 0.5
    return {
        "w1": jax.random.normal(k1, (3, 3, ch_in, ch_out), jnp.float32) * s1,
        "b1": jax.random.normal(k2, (ch_out,), jnp.float32) * 0.1,
        "alpha1": jnp.full((1,), 0.25, jnp.float32),     # nn.PReLU() default init
        "w2": jax.random.normal(k3, (3, 3, ch_out, ch_out), jnp.float32) * s2,
        "b2": jax.random.normal(k4, (ch_out,), jnp.float32) * 0.1,
        "alpha2": jnp.full((1,), 0.25, jnp.float32),
    }


if __name__ == "__main__":
    key = jax.random.PRNGKey(0)
    kx, kp = jax.random.split(key)
    N, CH_IN, CH_OUT, H, W = 2, 32, 64, 16, 16
    x = jax.random.normal(kx, (N, CH_IN, H, W), dtype=jnp.float32)
    params = build_params(kp, CH_IN, CH_OUT)

    out = jax.block_until_ready(downsampling_block(x, params))
    assert out.shape == (N, CH_OUT, H // 2, W // 2), out.shape
    assert bool(jnp.all(jnp.isfinite(out)))

    ref = jax.block_until_ready(downsampling_block_reference(x, params))
    np.testing.assert_allclose(np.asarray(out), np.asarray(ref), rtol=5e-2, atol=5e-2)
    print("KERNEL_OK")
</pallas_src>

<mosaic_0001>
module attributes {stable_mosaic.version = 11 : i64} {
  func.func @kernel(%arg0: i32, %arg1: memref<1x4x9x9x32xf32, #tpu.memory_space<vmem>>, %arg2: memref<9x32x64xbf16, #tpu.memory_space<vmem>>, %arg3: memref<1x64xf32, #tpu.memory_space<vmem>>, %arg4: memref<1x32xf32, #tpu.memory_space<vmem>>, %arg5: memref<9x64x64xbf16, #tpu.memory_space<vmem>>, %arg6: memref<1x64xf32, #tpu.memory_space<vmem>>, %arg7: memref<1x64xf32, #tpu.memory_space<vmem>>, %arg8: memref<1x8x8x64xf32, #tpu.memory_space<vmem>>, %arg9: memref<10x10x64xf32, #tpu.memory_space<vmem>>) attributes {dimension_semantics = [#tpu.dimension_semantics<parallel>], iteration_bounds = array<i64: 2>, scalar_prefetch = 0 : i64, scratch_operands = 1 : i64, tpu.core_type = #tpu.core_type<tc>, window_params = [{transform_indices = @transform_0, window_bounds = array<i64: 1, 4, 9, 9, 32>}, {pipeline_mode = #tpu.pipeline_mode<synchronous>, transform_indices = @transform_1, window_bounds = array<i64: 9, 32, 64>}, {pipeline_mode = #tpu.pipeline_mode<synchronous>, transform_indices = @transform_2, window_bounds = array<i64: 1, 64>}, {pipeline_mode = #tpu.pipeline_mode<synchronous>, transform_indices = @transform_3, window_bounds = array<i64: 1, 32>}, {pipeline_mode = #tpu.pipeline_mode<synchronous>, transform_indices = @transform_4, window_bounds = array<i64: 9, 64, 64>}, {pipeline_mode = #tpu.pipeline_mode<synchronous>, transform_indices = @transform_5, window_bounds = array<i64: 1, 64>}, {pipeline_mode = #tpu.pipeline_mode<synchronous>, transform_indices = @transform_6, window_bounds = array<i64: 1, 64>}, {transform_indices = @transform_7, window_bounds = array<i64: 1, 8, 8, 64>}]} {
    %c0 = arith.constant 0 : index
    %c0_0 = arith.constant 0 : index
    %0 = vector.load %arg4[%c0, %c0_0] : memref<1x32xf32, #tpu.memory_space<vmem>>, vector<1x32xf32>
    %1 = vector.shape_cast %0 : vector<1x32xf32> to vector<1x1x32xf32>
    %c0_1 = arith.constant 0 : index
    %c0_2 = arith.constant 0 : index
    %2 = vector.load %arg7[%c0_1, %c0_2] : memref<1x64xf32, #tpu.memory_space<vmem>>, vector<1x64xf32>
    %cst = arith.constant 0.000000e+00 : f32
    %3 = vector.broadcast %cst : f32 to vector<64x64xf32>
    %c0_3 = arith.constant 0 : index
    %c0_4 = arith.constant 0 : index
    %c0_5 = arith.constant 0 : index
    %c0_6 = arith.constant 0 : index
    %c0_7 = arith.constant 0 : index
    %4 = vector.load %arg1[%c0_3, %c0_4, %c0_5, %c0_6, %c0_7] : memref<1x4x9x9x32xf32, #tpu.memory_space<vmem>>, vector<1x1x9x9x32xf32>
    %5 = vector.shape_cast %4 : vector<1x1x9x9x32xf32> to vector<9x9x32xf32>
    %cst_8 = arith.constant 0.000000e+00 : f32
    %6 = vector.broadcast %cst_8 : f32 to vector<9x9x32xf32>
    %7 = arith.cmpf ogt, %5, %6 : vector<9x9x32xf32>
    %8 = vector.broadcast %1 : vector<1x1x32xf32> to vector<9x9x32xf32>
    %9 = arith.mulf %8, %5 : vector<9x9x32xf32>
    %10 = arith.select %7, %5, %9 : vector<9x9x32xi1>, vector<9x9x32xf32>
    %11 = vector.extract_strided_slice %10 {offsets = [0, 0, 0], sizes = [8, 8, 32], strides = [1, 1, 1]} : vector<9x9x32xf32> to vector<8x8x32xf32>
    %12 = vector.shape_cast %11 : vector<8x8x32xf32> to vector<64x32xf32>
    %13 = arith.truncf %12 : vector<64x32xf32> to vector<64x32xbf16>
    %c0_9 = arith.constant 0 : index
    %c0_10 = arith.constant 0 : index
    %c0_11 = arith.constant 0 : index
    %14 = vector.load %arg2[%c0_9, %c0_10, %c0_11] : memref<9x32x64xbf16, #tpu.memory_space<vmem>>, vector<1x32x64xbf16>
    %15 = vector.shape_cast %14 : vector<1x32x64xbf16> to vector<32x64xbf16>
    %cst_12 = arith.constant dense<0.000000e+00> : vector<64x64xf32>
    %16 = tpu.matmul %13, %15, %cst_12 {dimension_numbers = #tpu.dot_dimension_numbers<[1], [0], [0], [1], [0, 0, 1, 1], [], []>} : vector<64x32xbf16>, vector<32x64xbf16>, vector<64x64xf32> -> vector<64x64xf32>
    %17 = arith.addf %3, %16 : vector<64x64xf32>
    %18 = vector.extract_strided_slice %10 {offsets = [0, 1, 0], sizes = [8, 8, 32], strides = [1, 1, 1]} : vector<9x9x32xf32> to vector<8x8x32xf32>
    %19 = vector.shape_cast %18 : vector<8x8x32xf32> to vector<64x32xf32>
    %20 = arith.truncf %19 : vector<64x32xf32> to vector<64x32xbf16>
    %c2 = arith.constant 2 : index
    %c0_13 = arith.constant 0 : index
    %c0_14 = arith.constant 0 : index
    %21 = vector.load %arg2[%c2, %c0_13, %c0_14] : memref<9x32x64xbf16, #tpu.memory_space<vmem>>, vector<1x32x64xbf16>
    %22 = vector.shape_cast %21 : vector<1x32x64xbf16> to vector<32x64xbf16>
    %cst_15 = arith.constant dense<0.000000e+00> : vector<64x64xf32>
    %23 = tpu.matmul %20, %22, %cst_15 {dimension_numbers = #tpu.dot_dimension_numbers<[1], [0], [0], [1], [0, 0, 1, 1], [], []>} : vector<64x32xbf16>, vector<32x64xbf16>, vector<64x64xf32> -> vector<64x64xf32>
    %24 = arith.addf %17, %23 : vector<64x64xf32>
    %25 = vector.extract_strided_slice %10 {offsets = [1, 0, 0], sizes = [8, 8, 32], strides = [1, 1, 1]} : vector<9x9x32xf32> to vector<8x8x32xf32>
    %26 = vector.shape_cast %25 : vector<8x8x32xf32> to vector<64x32xf32>
    %27 = arith.truncf %26 : vector<64x32xf32> to vector<64x32xbf16>
    %c6 = arith.constant 6 : index
    %c0_16 = arith.constant 0 : index
    %c0_17 = arith.constant 0 : index
    %28 = vector.load %arg2[%c6, %c0_16, %c0_17] : memref<9x32x64xbf16, #tpu.memory_space<vmem>>, vector<1x32x64xbf16>
    %29 = vector.shape_cast %28 : vector<1x32x64xbf16> to vector<32x64xbf16>
    %cst_18 = arith.constant dense<0.000000e+00> : vector<64x64xf32>
    %30 = tpu.matmul %27, %29, %cst_18 {dimension_numbers = #tpu.dot_dimension_numbers<[1], [0], [0], [1], [0, 0, 1, 1], [], []>} : vector<64x32xbf16>, vector<32x64xbf16>, vector<64x64xf32> -> vector<64x64xf32>
    %31 = arith.addf %24, %30 : vector<64x64xf32>
    %32 = vector.extract_strided_slice %10 {offsets = [1, 1, 0], sizes = [8, 8, 32], strides = [1, 1, 1]} : vector<9x9x32xf32> to vector<8x8x32xf32>
    %33 = vector.shape_cast %32 : vector<8x8x32xf32> to vector<64x32xf32>
    %34 = arith.truncf %33 : vector<64x32xf32> to vector<64x32xbf16>
    %c8 = arith.constant 8 : index
    %c0_19 = arith.constant 0 : index
    %c0_20 = arith.constant 0 : index
    %35 = vector.load %arg2[%c8, %c0_19, %c0_20] : memref<9x32x64xbf16, #tpu.memory_space<vmem>>, vector<1x32x64xbf16>
    %36 = vector.shape_cast %35 : vector<1x32x64xbf16> to vector<32x64xbf16>
    %cst_21 = arith.constant dense<0.000000e+00> : vector<64x64xf32>
    %37 = tpu.matmul %34, %36, %cst_21 {dimension_numbers = #tpu.dot_dimension_numbers<[1], [0], [0], [1], [0, 0, 1, 1], [], []>} : vector<64x32xbf16>, vector<32x64xbf16>, vector<64x64xf32> -> vector<64x64xf32>
    %38 = arith.addf %31, %37 : vector<64x64xf32>
    %c0_22 = arith.constant 0 : index
    %c1 = arith.constant 1 : index
    %c0_23 = arith.constant 0 : index
    %c0_24 = arith.constant 0 : index
    %c0_25 = arith.constant 0 : index
    %39 = vector.load %arg1[%c0_22, %c1, %c0_23, %c0_24, %c0_25] : memref<1x4x9x9x32xf32, #tpu.memory_space<vmem>>, vector<1x1x9x9x32xf32>
    %40 = vector.shape_cast %39 : vector<1x1x9x9x32xf32> to vector<9x9x32xf32>
    %cst_26 = arith.constant 0.000000e+00 : f32
    %41 = vector.broadcast %cst_26 : f32 to vector<9x9x32xf32>
    %42 = arith.cmpf ogt, %40, %41 : vector<9x9x32xf32>
    %43 = vector.broadcast %1 : vector<1x1x32xf32> to vector<9x9x32xf32>
    %44 = arith.mulf %43, %40 : vector<9x9x32xf32>
    %45 = arith.select %42, %40, %44 : vector<9x9x32xi1>, vector<9x9x32xf32>
    %46 = vector.extract_strided_slice %45 {offsets = [0, 0, 0], sizes = [8, 8, 32], strides = [1, 1, 1]} : vector<9x9x32xf32> to vector<8x8x32xf32>
    %47 = vector.shape_cast %46 : vector<8x8x32xf32> to vector<64x32xf32>
    %48 = arith.truncf %47 : vector<64x32xf32> to vector<64x32xbf16>
    %c1_27 = arith.constant 1 : index
    %c0_28 = arith.constant 0 : index
    %c0_29 = arith.constant 0 : index
    %49 = vector.load %arg2[%c1_27, %c0_28, %c0_29] : memref<9x32x64xbf16, #tpu.memory_space<vmem>>, vector<1x32x64xbf16>
    %50 = vector.shape_cast %49 : vector<1x32x64xbf16> to vector<32x64xbf16>
    %cst_30 = arith.constant dense<0.000000e+00> : vector<64x64xf32>
    %51 = tpu.matmul %48, %50, %cst_30 {dimension_numbers = #tpu.dot_dimension_numbers<[1], [0], [0], [1], [0, 0, 1, 1], [], []>} : vector<64x32xbf16>, vector<32x64xbf16>, vector<64x64xf32> -> vector<64x64xf32>
    %52 = arith.addf %38, %51 : vector<64x64xf32>
    %53 = vector.extract_strided_slice %45 {offsets = [1, 0, 0], sizes = [8, 8, 32], strides = [1, 1, 1]} : vector<9x9x32xf32> to vector<8x8x32xf32>
    %54 = vector.shape_cast %53 : vector<8x8x32xf32> to vector<64x32xf32>
    %55 = arith.truncf %54 : vector<64x32xf32> to vector<64x32xbf16>
    %c7 = arith.constant 7 : index
    %c0_31 = arith.constant 0 : index
    %c0_32 = arith.constant 0 : index
    %56 = vector.load %arg2[%c7, %c0_31, %c0_32] : memref<9x32x64xbf16, #tpu.memory_space<vmem>>, vector<1x32x64xbf16>
    %57 = vector.shape_cast %56 : vector<1x32x64xbf16> to vector<32x64xbf16>
    %cst_33 = arith.constant dense<0.000000e+00> : vector<64x64xf32>
    %58 = tpu.matmul %55, %57, %cst_33 {dimension_numbers = #tpu.dot_dimension_numbers<[1], [0], [0], [1], [0, 0, 1, 1], [], []>} : vector<64x32xbf16>, vector<32x64xbf16>, vector<64x64xf32> -> vector<64x64xf32>
    %59 = arith.addf %52, %58 : vector<64x64xf32>
    %c0_34 = arith.constant 0 : index
    %c2_35 = arith.constant 2 : index
    %c0_36 = arith.constant 0 : index
    %c0_37 = arith.constant 0 : index
    %c0_38 = arith.constant 0 : index
    %60 = vector.load %arg1[%c0_34, %c2_35, %c0_36, %c0_37, %c0_38] : memref<1x4x9x9x32xf32, #tpu.memory_space<vmem>>, vector<1x1x9x9x32xf32>
    %61 = vector.shape_cast %60 : vector<1x1x9x9x32xf32> to vector<9x9x32xf32>
    %cst_39 = arith.constant 0.000000e+00 : f32
    %62 = vector.broadcast %cst_39 : f32 to vector<9x9x32xf32>
    %63 = arith.cmpf ogt, %61, %62 : vector<9x9x32xf32>
    %64 = vector.broadcast %1 : vector<1x1x32xf32> to vector<9x9x32xf32>
    %65 = arith.mulf %64, %61 : vector<9x9x32xf32>
    %66 = arith.select %63, %61, %65 : vector<9x9x32xi1>, vector<9x9x32xf32>
    %67 = vector.extract_strided_slice %66 {offsets = [0, 0, 0], sizes = [8, 8, 32], strides = [1, 1, 1]} : vector<9x9x32xf32> to vector<8x8x32xf32>
    %68 = vector.shape_cast %67 : vector<8x8x32xf32> to vector<64x32xf32>
    %69 = arith.truncf %68 : vector<64x32xf32> to vector<64x32xbf16>
    %c3 = arith.constant 3 : index
    %c0_40 = arith.constant 0 : index
    %c0_41 = arith.constant 0 : index
    %70 = vector.load %arg2[%c3, %c0_40, %c0_41] : memref<9x32x64xbf16, #tpu.memory_space<vmem>>, vector<1x32x64xbf16>
    %71 = vector.shape_cast %70 : vector<1x32x64xbf16> to vector<32x64xbf16>
    %cst_42 = arith.constant dense<0.000000e+00> : vector<64x64xf32>
    %72 = tpu.matmul %69, %71, %cst_42 {dimension_numbers = #tpu.dot_dimension_numbers<[1], [0], [0], [1], [0, 0, 1, 1], [], []>} : vector<64x32xbf16>, vector<32x64xbf16>, vector<64x64xf32> -> vector<64x64xf32>
    %73 = arith.addf %59, %72 : vector<64x64xf32>
    %74 = vector.extract_strided_slice %66 {offsets = [0, 1, 0], sizes = [8, 8, 32], strides = [1, 1, 1]} : vector<9x9x32xf32> to vector<8x8x32xf32>
    %75 = vector.shape_cast %74 : vector<8x8x32xf32> to vector<64x32xf32>
    %76 = arith.truncf %75 : vector<64x32xf32> to vector<64x32xbf16>
    %c5 = arith.constant 5 : index
    %c0_43 = arith.constant 0 : index
    %c0_44 = arith.constant 0 : index
    %77 = vector.load %arg2[%c5, %c0_43, %c0_44] : memref<9x32x64xbf16, #tpu.memory_space<vmem>>, vector<1x32x64xbf16>
    %78 = vector.shape_cast %77 : vector<1x32x64xbf16> to vector<32x64xbf16>
    %cst_45 = arith.constant dense<0.000000e+00> : vector<64x64xf32>
    %79 = tpu.matmul %76, %78, %cst_45 {dimension_numbers = #tpu.dot_dimension_numbers<[1], [0], [0], [1], [0, 0, 1, 1], [], []>} : vector<64x32xbf16>, vector<32x64xbf16>, vector<64x64xf32> -> vector<64x64xf32>
    %80 = arith.addf %73, %79 : vector<64x64xf32>
    %c0_46 = arith.constant 0 : index
    %c3_47 = arith.constant 3 : index
    %c0_48 = arith.constant 0 : index
    %c0_49 = arith.constant 0 : index
    %c0_50 = arith.constant 0 : index
    %81 = vector.load %arg1[%c0_46, %c3_47, %c0_48, %c0_49, %c0_50] : memref<1x4x9x9x32xf32, #tpu.memory_space<vmem>>, vector<1x1x9x9x32xf32>
    %82 = vector.shape_cast %81 : vector<1x1x9x9x32xf32> to vector<9x9x32xf32>
    %cst_51 = arith.constant 0.000000e+00 : f32
    %83 = vector.broadcast %cst_51 : f32 to vector<9x9x32xf32>
    %84 = arith.cmpf ogt, %82, %83 : vector<9x9x32xf32>
    %85 = vector.broadcast %1 : vector<1x1x32xf32> to vector<9x9x32xf32>
    %86 = arith.mulf %85, %82 : vector<9x9x32xf32>
    %87 = arith.select %84, %82, %86 : vector<9x9x32xi1>, vector<9x9x32xf32>
    %88 = vector.extract_strided_slice %87 {offsets = [0, 0, 0], sizes = [8, 8, 32], strides = [1, 1, 1]} : vector<9x9x32xf32> to vector<8x8x32xf32>
    %89 = vector.shape_cast %88 : vector<8x8x32xf32> to vector<64x32xf32>
    %90 = arith.truncf %89 : vector<64x32xf32> to vector<64x32xbf16>
    %c4 = arith.constant 4 : index
    %c0_52 = arith.constant 0 : index
    %c0_53 = arith.constant 0 : index
    %91 = vector.load %arg2[%c4, %c0_52, %c0_53] : memref<9x32x64xbf16, #tpu.memory_space<vmem>>, vector<1x32x64xbf16>
    %92 = vector.shape_cast %91 : vector<1x32x64xbf16> to vector<32x64xbf16>
    %cst_54 = arith.constant dense<0.000000e+00> : vector<64x64xf32>
    %93 = tpu.matmul %90, %92, %cst_54 {dimension_numbers = #tpu.dot_dimension_numbers<[1], [0], [0], [1], [0, 0, 1, 1], [], []>} : vector<64x32xbf16>, vector<32x64xbf16>, vector<64x64xf32> -> vector<64x64xf32>
    %94 = arith.addf %80, %93 : vector<64x64xf32>
    %c0_55 = arith.constant 0 : index
    %c0_56 = arith.constant 0 : index
    %95 = vector.load %arg3[%c0_55, %c0_56] : memref<1x64xf32, #tpu.memory_space<vmem>>, vector<1x64xf32>
    %96 = vector.broadcast %95 : vector<1x64xf32> to vector<64x64xf32>
    %97 = arith.addf %94, %96 : vector<64x64xf32>
    %cst_57 = arith.constant 0.000000e+00 : f32
    %98 = vector.broadcast %cst_57 : f32 to vector<64x64xf32>
    %99 = arith.cmpf ogt, %97, %98 : vector<64x64xf32>
    %100 = vector.broadcast %2 : vector<1x64xf32> to vector<64x64xf32>
    %101 = arith.mulf %100, %97 : vector<64x64xf32>
    %102 = arith.select %99, %97, %101 : vector<64x64xi1>, vector<64x64xf32>
    %cst_58 = arith.constant 0.000000e+00 : f32
    %103 = vector.broadcast %cst_58 : f32 to vector<1x10x64xf32>
    %c0_59 = arith.constant 0 : index
    %c0_60 = arith.constant 0 : index
    %c0_61 = arith.constant 0 : index
    %104 = vector.load %arg9[%c0_59, %c0_60, %c0_61] : memref<10x10x64xf32, #tpu.memory_space<vmem>>, vector<1x10x64xf32>
    tpu.vector_store %arg9[%c0_59, %c0_60, %c0_61], %103 {strides = array<i32>} : memref<10x10x64xf32, #tpu.memory_space<vmem>>, vector<1x10x64xf32>,
    %cst_62 = arith.constant 0.000000e+00 : f32
    %105 = vector.broadcast %cst_62 : f32 to vector<1x10x64xf32>
    %c9 = arith.constant 9 : index
    %c0_63 = arith.constant 0 : index
    %c0_64 = arith.constant 0 : index
    %106 = vector.load %arg9[%c9, %c0_63, %c0_64] : memref<10x10x64xf32, #tpu.memory_space<vmem>>, vector<1x10x64xf32>
    tpu.vector_store %arg9[%c9, %c0_63, %c0_64], %105 {strides = array<i32>} : memref<10x10x64xf32, #tpu.memory_space<vmem>>, vector<1x10x64xf32>,
    %cst_65 = arith.constant 0.000000e+00 : f32
    %107 = vector.broadcast %cst_65 : f32 to vector<10x1x64xf32>
    %c0_66 = arith.constant 0 : index
    %c0_67 = arith.constant 0 : index
    %c0_68 = arith.constant 0 : index
    %108 = vector.load %arg9[%c0_66, %c0_67, %c0_68] : memref<10x10x64xf32, #tpu.memory_space<vmem>>, vector<10x1x64xf32>
    tpu.vector_store %arg9[%c0_66, %c0_67, %c0_68], %107 {strides = array<i32>} : memref<10x10x64xf32, #tpu.memory_space<vmem>>, vector<10x1x64xf32>,
    %cst_69 = arith.constant 0.000000e+00 : f32
    %109 = vector.broadcast %cst_69 : f32 to vector<10x1x64xf32>
    %c0_70 = arith.constant 0 : index
    %c9_71 = arith.constant 9 : index
    %c0_72 = arith.constant 0 : index
    %110 = vector.load %arg9[%c0_70, %c9_71, %c0_72] : memref<10x10x64xf32, #tpu.memory_space<vmem>>, vector<10x1x64xf32>
    tpu.vector_store %arg9[%c0_70, %c9_71, %c0_72], %109 {strides = array<i32>} : memref<10x10x64xf32, #tpu.memory_space<vmem>>, vector<10x1x64xf32>,
    %111 = vector.shape_cast %102 : vector<64x64xf32> to vector<8x8x64xf32>
    %c1_73 = arith.constant 1 : index
    %c1_74 = arith.constant 1 : index
    %c0_75 = arith.constant 0 : index
    %112 = vector.load %arg9[%c1_73, %c1_74, %c0_75] : memref<10x10x64xf32, #tpu.memory_space<vmem>>, vector<8x8x64xf32>
    tpu.vector_store %arg9[%c1_73, %c1_74, %c0_75], %111 {strides = array<i32>} : memref<10x10x64xf32, #tpu.memory_space<vmem>>, vector<8x8x64xf32>,
    %cst_76 = arith.constant 0.000000e+00 : f32
    %113 = vector.broadcast %cst_76 : f32 to vector<64x64xf32>
    %c0_77 = arith.constant 0 : index
    %c0_78 = arith.constant 0 : index
    %c0_79 = arith.constant 0 : index
    %114 = vector.load %arg9[%c0_77, %c0_78, %c0_79] : memref<10x10x64xf32, #tpu.memory_space<vmem>>, vector<8x8x64xf32>
    %115 = vector.shape_cast %114 : vector<8x8x64xf32> to vector<64x64xf32>
    %116 = arith.truncf %115 : vector<64x64xf32> to vector<64x64xbf16>
    %c0_80 = arith.constant 0 : index
    %c0_81 = arith.constant 0 : index
    %c0_82 = arith.constant 0 : index
    %117 = vector.load %arg5[%c0_80, %c0_81, %c0_82] : memref<9x64x64xbf16, #tpu.memory_space<vmem>>, vector<1x64x64xbf16>
    %118 = vector.shape_cast %117 : vector<1x64x64xbf16> to vector<64x64xbf16>
    %cst_83 = arith.constant dense<0.000000e+00> : vector<64x64xf32>
    %119 = tpu.matmul %116, %118, %cst_83 {dimension_numbers = #tpu.dot_dimension_numbers<[1], [0], [0], [1], [0, 0, 1, 1], [], []>} : vector<64x64xbf16>, vector<64x64xbf16>, vector<64x64xf32> -> vector<64x64xf32>
    %120 = arith.addf %113, %119 : vector<64x64xf32>
    %c0_84 = arith.constant 0 : index
    %c1_85 = arith.constant 1 : index
    %c0_86 = arith.constant 0 : index
    %121 = vector.load %arg9[%c0_84, %c1_85, %c0_86] : memref<10x10x64xf32, #tpu.memory_space<vmem>>, vector<8x8x64xf32>
    %122 = vector.shape_cast %121 : vector<8x8x64xf32> to vector<64x64xf32>
    %123 = arith.truncf %122 : vector<64x64xf32> to vector<64x64xbf16>
    %c1_87 = arith.constant 1 : index
    %c0_88 = arith.constant 0 : index
    %c0_89 = arith.constant 0 : index
    %124 = vector.load %arg5[%c1_87, %c0_88, %c0_89] : memref<9x64x64xbf16, #tpu.memory_space<vmem>>, vector<1x64x64xbf16>
    %125 = vector.shape_cast %124 : vector<1x64x64xbf16> to vector<64x64xbf16>
    %cst_90 = arith.constant dense<0.000000e+00> : vector<64x64xf32>
    %126 = tpu.matmul %123, %125, %cst_90 {dimension_numbers = #tpu.dot_dimension_numbers<[1], [0], [0], [1], [0, 0, 1, 1], [], []>} : vector<64x64xbf16>, vector<64x64xbf16>, vector<64x64xf32> -> vector<64x64xf32>
    %127 = arith.addf %120, %126 : vector<64x64xf32>
    %c0_91 = arith.constant 0 : index
    %c2_92 = arith.constant 2 : index
    %c0_93 = arith.constant 0 : index
    %128 = vector.load %arg9[%c0_91, %c2_92, %c0_93] : memref<10x10x64xf32, #tpu.memory_space<vmem>>, vector<8x8x64xf32>
    %129 = vector.shape_cast %128 : vector<8x8x64xf32> to vector<64x64xf32>
    %130 = arith.truncf %129 : vector<64x64xf32> to vector<64x64xbf16>
    %c2_94 = arith.constant 2 : index
    %c0_95 = arith.constant 0 : index
    %c0_96 = arith.constant 0 : index
    %131 = vector.load %arg5[%c2_94, %c0_95, %c0_96] : memref<9x64x64xbf16, #tpu.memory_space<vmem>>, vector<1x64x64xbf16>
    %132 = vector.shape_cast %131 : vector<1x64x64xbf16> to vector<64x64xbf16>
    %cst_97 = arith.constant dense<0.000000e+00> : vector<64x64xf32>
    %133 = tpu.matmul %130, %132, %cst_97 {dimension_numbers = #tpu.dot_dimension_numbers<[1], [0], [0], [1], [0, 0, 1, 1], [], []>} : vector<64x64xbf16>, vector<64x64xbf16>, vector<64x64xf32> -> vector<64x64xf32>
    %134 = arith.addf %127, %133 : vector<64x64xf32>
    %c1_98 = arith.constant 1 : index
    %c0_99 = arith.constant 0 : index
    %c0_100 = arith.constant 0 : index
    %135 = vector.load %arg9[%c1_98, %c0_99, %c0_100] : memref<10x10x64xf32, #tpu.memory_space<vmem>>, vector<8x8x64xf32>
    %136 = vector.shape_cast %135 : vector<8x8x64xf32> to vector<64x64xf32>
    %137 = arith.truncf %136 : vector<64x64xf32> to vector<64x64xbf16>
    %c3_101 = arith.constant 3 : index
    %c0_102 = arith.constant 0 : index
    %c0_103 = arith.constant 0 : index
    %138 = vector.load %arg5[%c3_101, %c0_102, %c0_103] : memref<9x64x64xbf16, #tpu.memory_space<vmem>>, vector<1x64x64xbf16>
    %139 = vector.shape_cast %138 : vector<1x64x64xbf16> to vector<64x64xbf16>
    %cst_104 = arith.constant dense<0.000000e+00> : vector<64x64xf32>
    %140 = tpu.matmul %137, %139, %cst_104 {dimension_numbers = #tpu.dot_dimension_numbers<[1], [0], [0], [1], [0, 0, 1, 1], [], []>} : vector<64x64xbf16>, vector<64x64xbf16>, vector<64x64xf32> -> vector<64x64xf32>
    %141 = arith.addf %134, %140 : vector<64x64xf32>
    %c1_105 = arith.constant 1 : index
    %c1_106 = arith.constant 1 : index
    %c0_107 = arith.constant 0 : index
    %142 = vector.load %arg9[%c1_105, %c1_106, %c0_107] : memref<10x10x64xf32, #tpu.memory_space<vmem>>, vector<8x8x64xf32>
    %143 = vector.shape_cast %142 : vector<8x8x64xf32> to vector<64x64xf32>
    %144 = arith.truncf %143 : vector<64x64xf32> to vector<64x64xbf16>
    %c4_108 = arith.constant 4 : index
    %c0_109 = arith.constant 0 : index
    %c0_110 = arith.constant 0 : index
    %145 = vector.load %arg5[%c4_108, %c0_109, %c0_110] : memref<9x64x64xbf16, #tpu.memory_space<vmem>>, vector<1x64x64xbf16>
    %146 = vector.shape_cast %145 : vector<1x64x64xbf16> to vector<64x64xbf16>
    %cst_111 = arith.constant dense<0.000000e+00> : vector<64x64xf32>
    %147 = tpu.matmul %144, %146, %cst_111 {dimension_numbers = #tpu.dot_dimension_numbers<[1], [0], [0], [1], [0, 0, 1, 1], [], []>} : vector<64x64xbf16>, vector<64x64xbf16>, vector<64x64xf32> -> vector<64x64xf32>
    %148 = arith.addf %141, %147 : vector<64x64xf32>
    %c1_112 = arith.constant 1 : index
    %c2_113 = arith.constant 2 : index
    %c0_114 = arith.constant 0 : index
    %149 = vector.load %arg9[%c1_112, %c2_113, %c0_114] : memref<10x10x64xf32, #tpu.memory_space<vmem>>, vector<8x8x64xf32>
    %150 = vector.shape_cast %149 : vector<8x8x64xf32> to vector<64x64xf32>
    %151 = arith.truncf %150 : vector<64x64xf32> to vector<64x64xbf16>
    %c5_115 = arith.constant 5 : index
    %c0_116 = arith.constant 0 : index
    %c0_117 = arith.constant 0 : index
    %152 = vector.load %arg5[%c5_115, %c0_116, %c0_117] : memref<9x64x64xbf16, #tpu.memory_space<vmem>>, vector<1x64x64xbf16>
    %153 = vector.shape_cast %152 : vector<1x64x64xbf16> to vector<64x64xbf16>
    %cst_118 = arith.constant dense<0.000000e+00> : vector<64x64xf32>
    %154 = tpu.matmul %151, %153, %cst_118 {dimension_numbers = #tpu.dot_dimension_numbers<[1], [0], [0], [1], [0, 0, 1, 1], [], []>} : vector<64x64xbf16>, vector<64x64xbf16>, vector<64x64xf32> -> vector<64x64xf32>
    %155 = arith.addf %148, %154 : vector<64x64xf32>
    %c2_119 = arith.constant 2 : index
    %c0_120 = arith.constant 0 : index
    %c0_121 = arith.constant 0 : index
    %156 = vector.load %arg9[%c2_119, %c0_120, %c0_121] : memref<10x10x64xf32, #tpu.memory_space<vmem>>, vector<8x8x64xf32>
    %157 = vector.shape_cast %156 : vector<8x8x64xf32> to vector<64x64xf32>
    %158 = arith.truncf %157 : vector<64x64xf32> to vector<64x64xbf16>
    %c6_122 = arith.constant 6 : index
    %c0_123 = arith.constant 0 : index
    %c0_124 = arith.constant 0 : index
    %159 = vector.load %arg5[%c6_122, %c0_123, %c0_124] : memref<9x64x64xbf16, #tpu.memory_space<vmem>>, vector<1x64x64xbf16>
    %160 = vector.shape_cast %159 : vector<1x64x64xbf16> to vector<64x64xbf16>
    %cst_125 = arith.constant dense<0.000000e+00> : vector<64x64xf32>
    %161 = tpu.matmul %158, %160, %cst_125 {dimension_numbers = #tpu.dot_dimension_numbers<[1], [0], [0], [1], [0, 0, 1, 1], [], []>} : vector<64x64xbf16>, vector<64x64xbf16>, vector<64x64xf32> -> vector<64x64xf32>
    %162 = arith.addf %155, %161 : vector<64x64xf32>
    %c2_126 = arith.constant 2 : index
    %c1_127 = arith.constant 1 : index
    %c0_128 = arith.constant 0 : index
    %163 = vector.load %arg9[%c2_126, %c1_127, %c0_128] : memref<10x10x64xf32, #tpu.memory_space<vmem>>, vector<8x8x64xf32>
    %164 = vector.shape_cast %163 : vector<8x8x64xf32> to vector<64x64xf32>
    %165 = arith.truncf %164 : vector<64x64xf32> to vector<64x64xbf16>
    %c7_129 = arith.constant 7 : index
    %c0_130 = arith.constant 0 : index
    %c0_131 = arith.constant 0 : index
    %166 = vector.load %arg5[%c7_129, %c0_130, %c0_131] : memref<9x64x64xbf16, #tpu.memory_space<vmem>>, vector<1x64x64xbf16>
    %167 = vector.shape_cast %166 : vector<1x64x64xbf16> to vector<64x64xbf16>
    %cst_132 = arith.constant dense<0.000000e+00> : vector<64x64xf32>
    %168 = tpu.matmul %165, %167, %cst_132 {dimension_numbers = #tpu.dot_dimension_numbers<[1], [0], [0], [1], [0, 0, 1, 1], [], []>} : vector<64x64xbf16>, vector<64x64xbf16>, vector<64x64xf32> -> vector<64x64xf32>
    %169 = arith.addf %162, %168 : vector<64x64xf32>
    %c2_133 = arith.constant 2 : index
    %c2_134 = arith.constant 2 : index
    %c0_135 = arith.constant 0 : index
    %170 = vector.load %arg9[%c2_133, %c2_134, %c0_135] : memref<10x10x64xf32, #tpu.memory_space<vmem>>, vector<8x8x64xf32>
    %171 = vector.shape_cast %170 : vector<8x8x64xf32> to vector<64x64xf32>
    %172 = arith.truncf %171 : vector<64x64xf32> to vector<64x64xbf16>
    %c8_136 = arith.constant 8 : index
    %c0_137 = arith.constant 0 : index
    %c0_138 = arith.constant 0 : index
    %173 = vector.load %arg5[%c8_136, %c0_137, %c0_138] : memref<9x64x64xbf16, #tpu.memory_space<vmem>>, vector<1x64x64xbf16>
    %174 = vector.shape_cast %173 : vector<1x64x64xbf16> to vector<64x64xbf16>
    %cst_139 = arith.constant dense<0.000000e+00> : vector<64x64xf32>
    %175 = tpu.matmul %172, %174, %cst_139 {dimension_numbers = #tpu.dot_dimension_numbers<[1], [0], [0], [1], [0, 0, 1, 1], [], []>} : vector<64x64xbf16>, vector<64x64xbf16>, vector<64x64xf32> -> vector<64x64xf32>
    %176 = arith.addf %169, %175 : vector<64x64xf32>
    %c0_140 = arith.constant 0 : index
    %c0_141 = arith.constant 0 : index
    %177 = vector.load %arg6[%c0_140, %c0_141] : memref<1x64xf32, #tpu.memory_space<vmem>>, vector<1x64xf32>
    %178 = vector.broadcast %177 : vector<1x64xf32> to vector<64x64xf32>
    %179 = arith.addf %176, %178 : vector<64x64xf32>
    %180 = vector.shape_cast %179 : vector<64x64xf32> to vector<1x8x8x64xf32>
    %c0_142 = arith.constant 0 : index
    %c0_143 = arith.constant 0 : index
    %c0_144 = arith.constant 0 : index
    %c0_145 = arith.constant 0 : index
    %181 = vector.load %arg8[%c0_142, %c0_143, %c0_144, %c0_145] : memref<1x8x8x64xf32, #tpu.memory_space<vmem>>, vector<1x8x8x64xf32>
    tpu.vector_store %arg8[%c0_142, %c0_143, %c0_144, %c0_145], %180 {strides = array<i32>} : memref<1x8x8x64xf32, #tpu.memory_space<vmem>>, vector<1x8x8x64xf32>,
    return
  }
  func.func @transform_0(%arg0: i32) -> (i32, i32, i32, i32, i32) {
    %c0_i32 = arith.constant 0 : i32
    %c0_i32_0 = arith.constant 0 : i32
    %c0_i32_1 = arith.constant 0 : i32
    %c0_i32_2 = arith.constant 0 : i32
    %c0_i32_3 = arith.constant 0 : i32
    return %arg0, %c0_i32, %c0_i32_0, %c0_i32_1, %c0_i32_2 : i32, i32, i32, i32, i32
  }
  func.func @transform_1(%arg0: i32) -> (i32, i32, i32) {
    %c0_i32 = arith.constant 0 : i32
    %c0_i32_0 = arith.constant 0 : i32
    %c0_i32_1 = arith.constant 0 : i32
    %c0_i32_2 = arith.constant 0 : i32
    return %c0_i32, %c0_i32_0, %c0_i32_1 : i32, i32, i32
  }
  func.func @transform_2(%arg0: i32) -> (i32, i32) {
    %c0_i32 = arith.constant 0 : i32
    %c0_i32_0 = arith.constant 0 : i32
    %c0_i32_1 = arith.constant 0 : i32
    return %c0_i32, %c0_i32_0 : i32, i32
  }
  func.func @transform_3(%arg0: i32) -> (i32, i32) {
    %c0_i32 = arith.constant 0 : i32
    %c0_i32_0 = arith.constant 0 : i32
    %c0_i32_1 = arith.constant 0 : i32
    return %c0_i32, %c0_i32_0 : i32, i32
  }
  func.func @transform_4(%arg0: i32) -> (i32, i32, i32) {
    %c0_i32 = arith.constant 0 : i32
    %c0_i32_0 = arith.constant 0 : i32
    %c0_i32_1 = arith.constant 0 : i32
    %c0_i32_2 = arith.constant 0 : i32
    return %c0_i32, %c0_i32_0, %c0_i32_1 : i32, i32, i32
  }
  func.func @transform_5(%arg0: i32) -> (i32, i32) {
    %c0_i32 = arith.constant 0 : i32
    %c0_i32_0 = arith.constant 0 : i32
    %c0_i32_1 = arith.constant 0 : i32
    return %c0_i32, %c0_i32_0 : i32, i32
  }
  func.func @transform_6(%arg0: i32) -> (i32, i32) {
    %c0_i32 = arith.constant 0 : i32
    %c0_i32_0 = arith.constant 0 : i32
    %c0_i32_1 = arith.constant 0 : i32
    return %c0_i32, %c0_i32_0 : i32, i32
  }
  func.func @transform_7(%arg0: i32) -> (i32, i32, i32, i32) {
    %c0_i32 = arith.constant 0 : i32
    %c0_i32_0 = arith.constant 0 : i32
    %c0_i32_1 = arith.constant 0 : i32
    %c0_i32_2 = arith.constant 0 : i32
    return %arg0, %c0_i32, %c0_i32_0, %c0_i32_1 : i32, i32, i32, i32
  }
}

</mosaic_0001>

<bundles_post_ra>
// kernel: downsampling_block.1
= control target key start
LH: loop header
LB: loop body
LE: loop exit
PB: predicated region body
PF: predicated region fallthrough
CT: control target
= control target key end

     0   :  { %12 = vsyncpa [#allocation4], 0  ;;  %s3709_s0 = inlined_call_operand.vmem [shape: f32[2,4,9,9,32], index: 0, kind: input, shape index: {}]   ;;  %s3710_s1 = inlined_call_operand.vmem [shape: bf16[9,32,64], index: 1, kind: input, shape index: {}]   ;;  %s3711_s2 = inlined_call_operand.vmem [shape: f32[1,64], index: 2, kind: input, shape index: {}]   ;;  %s3712_s3 = inlined_call_operand.vmem [shape: f32[1,32], index: 3, kind: input, shape index: {}]   ;;  %s3713_s4 = inlined_call_operand.vmem [shape: bf16[9,64,64], index: 4, kind: input, shape index: {}]   ;;  %s3714_s5 = inlined_call_operand.vmem [shape: f32[1,64], index: 5, kind: input, shape index: {}]   ;;  %s3715_s6 = inlined_call_operand.vmem [shape: f32[1,64], index: 6, kind: input, shape index: {}]   ;;  %s3716_s7 = inlined_call_operand.hbm [shape: f32[2,8,8,64], index: 7, kind: output, shape index: {}]  }
   0x1   :  { %14 = vsyncpa [#allocation4 + $0x1], 0  ;;  %s2852_s24 = smov 0   ;;  %s2854_s25 = smov 0  }
   0x2   :  { %s2856_s26 = smov 0   ;;  %s2858_s27 = smov 0  }
   0x3 LB: > { %s2873_s28 = sadd.s32 4294967295, %s2807_s27   ;;  %s2211_s29 = sadd.s32 4294967294, %s2807_s27   ;;  %s2807_s27 = sphi %s2858_s27, %s3722_s27   ;;  %s2803_s26 = sphi %s2856_s26, %s3721_s26   ;;  %s2799_s25 = sphi %s2854_s25, %s3720_s25   ;;  %s2795_s24 = sphi %s2852_s24, %s3719_s24  }
   0x4   : > { %s2877_s30 = sadd.s32 1, %s2807_s27   ;;  %s179_s8 = sadd.s32 1, %s2803_s26 }
   0x5   : > { %s176_s9 = ssub.s32 %s2807_s27, %s2877_s30  ;;  %p189_p0 = scmp.ne.s32.totalorder %s2803_s26, %s2799_s25 }
   0x6   : > { %p177_p1 = scmp.eq.s32.totalorder %s176_s9, 0  ;;  %p190_p2 = scmp.eq.s32.totalorder %s2873_s28, 1 }
   0x7   : > { %p195_p3 = scmp.ne.s32.totalorder %s2799_s25, %s2795_s24  ;;  %p196_p4 = scmp.eq.s32.totalorder %s2211_s29, 1 }
   0x8   : > { %s2888_s10 = scalar_select %p177_p1, %s2803_s26, %s179_s8  }
   0x9   : > { %p2890_p5 = por %p190_p2, %p189_p0  ;;  %p2894_p6 = por %p196_p4, %p195_p3 }
   0xa   : > { %p2214_p7 = scmp.ge.s32.totalorder %s2807_s27, 1  ;;  %p240_p8 = scmp.lt.s32.totalorder %s2807_s27, 3 }
   0xc   : > { %p241_p9 = pnand %p2214_p7, %p240_p8 }
   0xd   : > { %p272_p10 = scmp.lt.s32.totalorder (!%p241_p9), %s2873_s28, 1  ;;  %s2693_s9 = sshll.u32 (!%p241_p9), %s2873_s28, 6 }
   0xe   : > { %244 = sbr.rel (%p241_p9) target bundleno = 602 (0x25a), region = 48  ;;  %s2765_s23 = scalar_lea.hbm (!%p241_p9), %s3716_s7, 128 }
  0x13   : > { %v2640_v0 = vld [vmem:[%s3710_s1 + $0x8] sm:$0xff]  ;;  %v2639_v2 = vld [vmem:[%s3710_s1] sm:$0xff]  ;;  %s273_s21 = scalar_select %p272_p10, %s2873_s28, 1  ;;  %v2648_v7 = vld [vmem:[%s3710_s1 + $0x18] sm:$0xff]  ;;  %vm433_vm0 = vcmask 261120   ;;  %vm379_vm1 = vcmask 1046528  }
  0x14   : > { %v2642_v1 = vld [vmem:[%s3710_s1 + $0x28] sm:$0xff]  ;;  %2696 = vmatpush.bf16.msra.mxu3 %v2640_v0  ;;  %v2641_v3 = vld [vmem:[%s3710_s1 + $0x20] sm:$0xff]  ;;  %505 = vmatpush.bf16.msra.mxu1 %v2640_v0  ;;  %v2647_v13 = vld [vmem:[%s3710_s1 + $0x10] sm:$0xff] }
  0x15   : > { %2694 = vmatpush.bf16.msra.mxu2 %v2642_v1  ;;  %452 = vmatpush.bf16.msra.mxu0 %v2642_v1  ;;  %v2917_v4 = vld [vmem:[%s3712_s3] ss:$0 sm:$0xff]  ;;  %s2698_s29 = smul.u32 576, %s273_s21  ;;  %v2644_v5 = vld [vmem:[%s3710_s1 + $0x68] sm:$0xff]  ;;  %v2652_v56 = vld [vmem:[%s3710_s1 + $0x38] sm:$0xff]  ;;  %s269_s21 = sand.u32 1, %s2799_s25  }
  0x16   : > { %v2646_v6 = vld [vmem:[%s3710_s1 + $0x88] sm:$0xff]  ;;  %v2643_v8 = vld [vmem:[%s3710_s1 + $0x60] sm:$0xff]  ;;  %s2215_s22 = sshll.u32 %s269_s21, 6  ;;  %s2134_s28 = scalar_lea.sflag [#allocation4], %s269_s21 }
  0x17   : > { %s2931_s19 = scalar_lea.vmem %s3709_s0, %s2698_s29  ;;  %v2645_v9 = vld [vmem:[%s3710_s1 + $0x80] sm:$0xff]  ;;  %s3629_s8 = scalar_lea.vmem [#allocation3], %s2215_s22 }
  0x18   : > { %2697 = vmatpush.bf16.msra.mxu3 %v2639_v2  ;;  %v288_v10 = vld [vmem:[%s2931_s19 + $0x40] sm:$0xff]  ;;  %v290_v11 = vld [vmem:[%s2931_s19 + $0x50] sm:$0xff]  ;;  %506 = vmatpush.bf16.msra.mxu1 %v2639_v2  ;;  %v289_v12 = vld [vmem:[%s2931_s19 + $0x48] sm:$0x1]  ;;  %s2146_s15 = sshll.u32 %s3629_s8, 4  ;;  %s2147_s15 = int_to_ptr.vmem [resolvable:$true] %s2146_s15 }
  0x19   : > { %2695 = vmatpush.bf16.msra.mxu2 %v2641_v3  ;;  %453 = vmatpush.bf16.msra.mxu0 %v2641_v3  ;;  %vm306_vm2 = vcmp.gt.f32.partialorder %v288_v10, 0.0  ;;  %vm308_vm3 = vcmp.gt.f32.partialorder %v290_v11, 0.0  ;;  %v327_v14 = vmul.f32 %v2917_v4, %v288_v10  ;;  %v329_v15 = vmul.f32 %v2917_v4, %v290_v11  ;;  %v291_v16 = vld [vmem:[%s2931_s19 + $0x58] sm:$0x1]  ;;  %v280_v17 = vld [vmem:[%s2931_s19] sm:$0xff]  ;;  %v282_v18 = vld [vmem:[%s2931_s19 + $0x10] sm:$0xff] }
  0x1a   : > { %vm307_vm4 = vcmp.gt.f32.partialorder %v289_v12, 0.0  ;;  %vm309_vm5 = vcmp.gt.f32.partialorder %v291_v16, 0.0  ;;  %v328_v19 = vmul.f32 %v2917_v4, %v289_v12  ;;  %v330_v20 = vmul.f32 %v2917_v4, %v291_v16  ;;  %v281_v21 = vld [vmem:[%s2931_s19 + $0x8] sm:$0x1]  ;;  %v283_v22 = vld [vmem:[%s2931_s19 + $0x18] sm:$0x1] }
  0x1b   : > { %v2955_v23 = vsel %vm306_vm2, %v288_v10, %v327_v14  ;;  %v2958_v24 = vsel %vm308_vm3, %v290_v11, %v329_v15  ;;  %vm298_vm6 = vcmp.gt.f32.partialorder %v280_v17, 0.0  ;;  %vm299_vm7 = vcmp.gt.f32.partialorder %v281_v21, 0.0  ;;  %v292_v29 = vld [vmem:[%s2931_s19 + $0x60] sm:$0xff]  ;;  %v294_v30 = vld [vmem:[%s2931_s19 + $0x70] sm:$0xff]  ;;  %v293_v43 = vld [vmem:[%s2931_s19 + $0x68] sm:$0x1] }
  0x1c   : > { %643 = vmatpush.bf16.msrb.mxu3 %v2646_v6  ;;  %v357_v25 = vpack.c.bf16 %v2958_v24, %v2955_v23  ;;  %v392_v26 = vrot.slane %v2955_v23, 1  ;;  %v395_v27 = vrot.slane %v2958_v24, 1  ;;  %v346_v28 = vsel %vm307_vm4, %v289_v12, %v328_v19  ;;  %v295_v44 = vld [vmem:[%s2931_s19 + $0x78] sm:$0x1]  ;;  %v284_v55 = vld [vmem:[%s2931_s19 + $0x20] sm:$0xff]  ;;  %v286_v62 = vld [vmem:[%s2931_s19 + $0x30] sm:$0xff] }
  0x1d   : > { %567 = vmatpush.bf16.msrb.mxu2 %v2644_v5  ;;  %750 = vmatpush.bf16.msrb.mxu0 %v2648_v7  ;;  %v348_v31 = vsel %vm309_vm5, %v291_v16, %v330_v20  ;;  %v393_v32 = vrot.slane %v346_v28, 1  ;;  %vm300_vm8 = vcmp.gt.f32.partialorder %v282_v18, 0.0  ;;  %vm301_vm9 = vcmp.gt.f32.partialorder %v283_v22, 0.0  ;;  %v285_v61 = vld [vmem:[%s2931_s19 + $0x28] sm:$0x1]  ;;  %v2650_v10 = vld [vmem:[%s3710_s1 + $0x78] sm:$0xff] }
  0x1e   : > { %2243 = vmatmul.msk.bf16.vlgmr.msra.gmra.mxu3 %vm433_vm0, %v357_v25  ;;  %v396_v33 = vrot.slane %v348_v31, 1  ;;  %v319_v34 = vmul.f32 %v2917_v4, %v280_v17  ;;  %v320_v35 = vmul.f32 %v2917_v4, %v281_v21  ;;  %v321_v36 = vmul.f32 %v2917_v4, %v282_v18  ;;  %v287_v2 = vld [vmem:[%s2931_s19 + $0x38] sm:$0x1]  ;;  %v2656_v14 = vld [vmem:[%s3710_s1 + $0x48] sm:$0xff]  ;;  %820 = vmatpush.bf16.msrb.mxu1 %v2650_v10  ;;  %v2649_v16 = vld [vmem:[%s3710_s1 + $0x70] sm:$0xff] }
  0x1f   : > { %v2972_v37 = vsel %vm379_vm1, %v392_v26, %v393_v32  ;;  %v322_v38 = vmul.f32 %v2917_v4, %v283_v22  ;;  %vm310_vm10 = vcmp.gt.f32.partialorder %v292_v29, 0.0  ;;  %vm312_vm11 = vcmp.gt.f32.partialorder %v294_v30, 0.0 }
  0x20   : > { %644 = vmatpush.bf16.msrb.mxu3 %v2645_v9  ;;  %v2976_v39 = vsel %vm379_vm1, %v395_v27, %v396_v33  ;;  %v337_v40 = vsel %vm298_vm6, %v280_v17, %v319_v34  ;;  %v338_v41 = vsel %vm299_vm7, %v281_v21, %v320_v35  ;;  %v2981_v42 = vsel %vm300_vm8, %v282_v18, %v321_v36  ;;  %v2654_v9 = vld [vmem:[%s3710_s1 + $0x58] sm:$0xff]  ;;  %v2279_v35 = vld [vmem:[%s2931_s19 + $0xb0] sm:$0xff]  ;;  %v2278_v36 = vld [vmem:[%s2931_s19 + $0xa0] sm:$0xff] }
  0x21   : > { %568 = vmatpush.bf16.msrb.mxu2 %v2643_v8  ;;  %751 = vmatpush.bf16.msrb.mxu0 %v2647_v13  ;;  %v414_v45 = vpack.c.bf16 %v2976_v39, %v2972_v37  ;;  %v340_v46 = vsel %vm301_vm9, %v283_v22, %v322_v38  ;;  %v380_v47 = vrot.slane %v337_v40, 1  ;;  %v381_v48 = vrot.slane %v338_v41, 1  ;;  %v2277_v38 = vld [vmem:[%s2931_s19 + $0x90] sm:$0xff] }
  0x22   : > { %v383_v49 = vrot.slane %v2981_v42, 1  ;;  %v384_v50 = vrot.slane %v340_v46, 1  ;;  %v355_v51 = vpack.c.bf16 %v2981_v42, %v337_v40  ;;  %v331_v52 = vmul.f32 %v2917_v4, %v292_v29  ;;  %821 = vmatpush.bf16.msrb.mxu1 %v2649_v16 }
  0x23   : > { %2231 = vmatmul.msk.bf16.vlgmr.msra.gmra.mxu2 %vm433_vm0, %v414_v45  ;;  %v382_v53 = vsel %vm379_vm1, %v380_v47, %v381_v48  ;;  %v333_v54 = vmul.f32 %v2917_v4, %v294_v30  ;;  %vm311_vm12 = vcmp.gt.f32.partialorder %v293_v43, 0.0  ;;  %vm313_vm13 = vcmp.gt.f32.partialorder %v295_v44, 0.0 }
  0x24   : > { %v2999_v57 = vsel %vm379_vm1, %v383_v49, %v384_v50  ;;  %2241 = vmatmul.msk.bf16.vlgmr.msra.gmra.mxu1 %vm433_vm0, %v355_v51  ;;  %v3003_v58 = vsel %vm310_vm10, %v292_v29, %v331_v52  ;;  %v332_v59 = vmul.f32 %v2917_v4, %v293_v43  ;;  %v334_v60 = vmul.f32 %v2917_v4, %v295_v44  ;;  %v2651_v51 = vld [vmem:[%s3710_s1 + $0x30] sm:$0xff] }
  0x25   : > { %v412_v63 = vpack.c.bf16 %v2999_v57, %v382_v53  ;;  %v3011_v0 = vsel %vm312_vm11, %v294_v30, %v333_v54  ;;  %v398_v1 = vrot.slane %v3003_v58, 1  ;;  %955 = vmatpush.bf16.msra.mxu2 %v2652_v56  ;;  %vm302_vm14 = vcmp.gt.f32.partialorder %v284_v55, 0.0  ;;  %1073 = vmatpush.bf16.msra.mxu3 %v2654_v9  ;;  %v2281_v52 = vld [vmem:[%s2931_s19 + $0xd0] sm:$0xff]  ;;  %v2655_v53 = vld [vmem:[%s3710_s1 + $0x40] sm:$0xff] }
  0x26   : > { %v401_v3 = vrot.slane %v3011_v0, 1  ;;  %v350_v5 = vsel %vm311_vm12, %v293_v43, %v332_v59  ;;  %v352_v6 = vsel %vm313_vm13, %v295_v44, %v334_v60  ;;  %vm303_vm15 = vcmp.gt.f32.partialorder %v285_v61, 0.0  ;;  %v2280_v54 = vld [vmem:[%s2931_s19 + $0xc0] sm:$0xff] }
  0x27   : > { %2229 = vmatmul.msk.bf16.vlgmr.msra.gmra.mxu0 %vm433_vm0, %v412_v63  ;;  %v399_v7 = vrot.slane %v350_v5, 1  ;;  %v402_v8 = vrot.slane %v352_v6, 1  ;;  %vm304_vm2 = vcmp.gt.f32.partialorder %v286_v62, 0.0  ;;  %vm305_vm3 = vcmp.gt.f32.partialorder %v287_v2, 0.0  ;;  %v297_v5 = vld [vmem:[%s2931_s19 + $0x88] sm:$0x1] }
  0x28   : > { %v323_v11 = vmul.f32 %v2917_v4, %v284_v55  ;;  %v324_v12 = vmul.f32 %v2917_v4, %v285_v61  ;;  %v325_v13 = vmul.f32 %v2917_v4, %v286_v62  ;;  %v326_v15 = vmul.f32 %v2917_v4, %v287_v2  ;;  %1176 = vmatpush.bf16.msra.mxu0 %v2656_v14 }
  0x29   : > { %v358_v17 = vpack.c.bf16 %v3011_v0, %v3003_v58  ;;  %v3039_v21 = vsel %vm379_vm1, %v398_v1, %v399_v7  ;;  %v3042_v22 = vsel %vm379_vm1, %v401_v3, %v402_v8  ;;  %v695_v40 = vmul.f32 %v2917_v4, %v2279_v35  ;;  %956 = vmatpush.bf16.msra.mxu2 %v2651_v51  ;;  %v2283_v1 = vld [vmem:[%s2931_s19 + $0xf0] sm:$0xff]  ;;  %v296_v3 = vld [vmem:[%s2931_s19 + $0x80] sm:$0xff]  ;;  %v2323_v51 = vld [vmem:[%s2931_s19 + $0x148] sm:$0x1] }
  0x2a   : > { %v341_v18 = vsel %vm302_vm14, %v284_v55, %v323_v11  ;;  %v342_v19 = vsel %vm303_vm15, %v285_v61, %v324_v12  ;;  %v343_v20 = vsel %vm304_vm2, %v286_v62, %v325_v13  ;;  %v344_v25 = vsel %vm305_vm3, %v287_v2, %v326_v15 }
  0x2b   : > { %v386_v26 = vrot.slane %v341_v18, 1  ;;  %v387_v27 = vrot.slane %v342_v19, 1  ;;  %v389_v28 = vrot.slane %v343_v20, 1  ;;  %v390_v29 = vrot.slane %v344_v25, 1  ;;  %v2318_v19 = vld [vmem:[%s2931_s19 + $0x120] sm:$0xff] }
  0x2c   : > { %v415_v30 = vpack.c.bf16 %v3042_v22, %v3039_v21  ;;  %v356_v33 = vpack.c.bf16 %v343_v20, %v341_v18  ;;  %vm686_vm4 = vcmp.gt.f32.partialorder %v2279_v35, 0.0  ;;  %v694_v43 = vmul.f32 %v2917_v4, %v2278_v36  ;;  %1177 = vmatpush.bf16.msra.mxu0 %v2655_v53  ;;  %v2321_v25 = vld [vmem:[%s2931_s19 + $0x138] sm:$0x1] }
  0x2d   : > { %v388_v31 = vsel %vm379_vm1, %v386_v26, %v387_v27  ;;  %v391_v32 = vsel %vm379_vm1, %v389_v28, %v390_v29  ;;  %vm685_vm5 = vcmp.gt.f32.partialorder %v2278_v36, 0.0  ;;  %v693_v44 = vmul.f32 %v2917_v4, %v2277_v38 }
  0x2e   : > { %2244 = vmatmul.msk.bf16.gmra.mxu3 %vm433_vm0, %v358_v17  ;;  %v413_v34 = vpack.c.bf16 %v391_v32, %v388_v31  ;;  %v604_v41 = vpack.c.bf16 %v388_v31, %v2999_v57  ;;  %vm684_vm6 = vcmp.gt.f32.partialorder %v2277_v38, 0.0  ;;  %v704_v45 = vsel %vm686_vm4, %v2279_v35, %v695_v40  ;;  %v2285_v17 = vld [vmem:[%s2931_s19 + $0x110] sm:$0xff] }
  0x2f   : > { %v528_v46 = vpack.c.bf16 %v341_v18, %v2981_v42  ;;  %v703_v47 = vsel %vm685_vm5, %v2278_v36, %v694_v43  ;;  %v702_v48 = vsel %vm684_vm6, %v2277_v38, %v693_v44  ;;  %v2653_v42 = vld [vmem:[%s3710_s1 + $0x50] sm:$0xff]  ;;  %v697_v55 = vmul.f32 %v2917_v4, %v2281_v52 }
  0x30   : > { %v781_v49 = vpack.c.bf16 %v704_v45, %v703_v47  ;;  %v711_v50 = vpack.c.bf16 %v703_v47, %v702_v48  ;;  %1074 = vmatpush.bf16.msra.mxu3 %v2653_v42  ;;  %v605_v56 = vpack.c.bf16 %v2972_v37, %v391_v32  ;;  %vm688_vm7 = vcmp.gt.f32.partialorder %v2281_v52, 0.0  ;;  %v2282_v37 = vld [vmem:[%s2931_s19 + $0xe0] sm:$0xff]  ;;  %v2366_v48 = vld [vmem:[%s2931_s19 + $0x1b0] sm:$0xff]  ;;  %v2325_v42 = vld [vmem:[%s2931_s19 + $0x158] sm:$0x1] }
  0x31   : > { %v696_v57 = vmul.f32 %v2917_v4, %v2280_v54  ;;  %vm687_vm8 = vcmp.gt.f32.partialorder %v2280_v54, 0.0  ;;  %v706_v59 = vsel %vm688_vm7, %v2281_v52, %v697_v55  ;;  %v529_v60 = vpack.c.bf16 %v2955_v23, %v343_v20  ;;  %v2319_v20 = vld [vmem:[%s2931_s19 + $0x128] sm:$0x1]  ;;  %v2324_v52 = vld [vmem:[%s2931_s19 + $0x150] sm:$0xff] }
  0x32   : > { %v699_v2 = vmul.f32 %v2917_v4, %v2283_v1  ;;  %v606_v6 = vpack.c.bf16 %v3039_v21, %v2976_v39  ;;  %vm690_vm9 = vcmp.gt.f32.partialorder %v2283_v1, 0.0  ;;  %v698_v23 = vmul.f32 %v2917_v4, %v2282_v37  ;;  %v2320_v21 = vld [vmem:[%s2931_s19 + $0x130] sm:$0xff] }
  0x33   : > { %2232 = vmatmul.msk.bf16.gmra.mxu2 %vm433_vm0, %v415_v30  ;;  %v705_v61 = vsel %vm687_vm8, %v2280_v54, %v696_v57  ;;  %vm689_vm10 = vcmp.gt.f32.partialorder %v2282_v37, 0.0  ;;  %v335_v7 = vmul.f32 %v2917_v4, %v296_v3  ;;  %v336_v8 = vmul.f32 %v2917_v4, %v297_v5 }
  0x34   : > { %2242 = vmatmul.msk.bf16.gmra.mxu1 %vm433_vm0, %v356_v33  ;;  %v782_v62 = vpack.c.bf16 %v706_v59, %v705_v61  ;;  %v712_v63 = vpack.c.bf16 %v705_v61, %v704_v45  ;;  %v708_v9 = vsel %vm690_vm9, %v2283_v1, %v699_v2  ;;  %vm314_vm11 = vcmp.gt.f32.partialorder %v296_v3, 0.0 }
  0x35   : > { %vm315_vm12 = vcmp.gt.f32.partialorder %v297_v5, 0.0  ;;  %v530_v10 = vpack.c.bf16 %v3003_v58, %v2958_v24  ;;  %v707_v39 = vsel %vm689_vm10, %v2282_v37, %v698_v23  ;;  %v353_v12 = vsel %vm314_vm11, %v296_v3, %v335_v7  ;;  %v2284_v24 = vld [vmem:[%s2931_s19 + $0x100] sm:$0xff] }
  0x36   : > { %v783_v11 = vpack.c.bf16 %v708_v9, %v707_v39  ;;  %v354_v13 = vsel %vm315_vm12, %v297_v5, %v336_v8  ;;  %v713_v14 = vpack.c.bf16 %v707_v39, %v706_v59  ;;  %v600_v15 = vrot.slane %v353_v12, 1  ;;  %v2368_v39 = vld [vmem:[%s2931_s19 + $0x1d0] sm:$0xff] }
  0x37   : > { %2230 = vmatmul.msk.bf16.gmra.mxu0 %vm433_vm0, %v413_v34  ;;  %v601_v16 = vrot.slane %v354_v13, 1  ;;  %v701_v58 = vmul.f32 %v2917_v4, %v2285_v17  ;;  %vm692_vm13 = vcmp.gt.f32.partialorder %v2285_v17, 0.0  ;;  %v700_v27 = vmul.f32 %v2917_v4, %v2284_v24  ;;  %v2327_v13 = vld [vmem:[%s2931_s19 + $0x168] sm:$0x1] }
  0x38   : > { %vm691_vm14 = vcmp.gt.f32.partialorder %v2284_v24, 0.0  ;;  %v884_v28 = vmul.f32 %v2917_v4, %v2318_v19  ;;  %v885_v30 = vmul.f32 %v2917_v4, %v2319_v20  ;;  %v886_v31 = vmul.f32 %v2917_v4, %v2320_v21 }
  0x39   : > { %v602_v18 = vsel %vm379_vm1, %v600_v15, %v601_v16  ;;  %v710_v29 = vsel %vm692_vm13, %v2285_v17, %v701_v58  ;;  %v887_v32 = vmul.f32 %v2917_v4, %v2321_v25  ;;  %vm868_vm15 = vcmp.gt.f32.partialorder %v2318_v19, 0.0  ;;  %v2329_v15 = vld [vmem:[%s2931_s19 + $0x178] sm:$0x1] }
  0x3a   : > { %v607_v26 = vpack.c.bf16 %v602_v18, %v3042_v22  ;;  %vm869_vm2 = vcmp.gt.f32.partialorder %v2319_v20, 0.0  ;;  %vm870_vm3 = vcmp.gt.f32.partialorder %v2320_v21, 0.0  ;;  %vm871_vm4 = vcmp.gt.f32.partialorder %v2321_v25, 0.0 }
  0x3b   : > { %v709_v33 = vsel %vm691_vm14, %v2284_v24, %v700_v27  ;;  %v531_v22 = vpack.c.bf16 %v353_v12, %v3011_v0  ;;  %v900_v35 = vsel %vm868_vm15, %v2318_v19, %v884_v28  ;;  %v901_v36 = vsel %vm869_vm2, %v2319_v20, %v885_v30  ;;  %v2326_v12 = vld [vmem:[%s2931_s19 + $0x160] sm:$0xff] }
  0x3c   : > { %v784_v34 = vpack.c.bf16 %v710_v29, %v709_v33  ;;  %v902_v38 = vsel %vm870_vm3, %v2320_v21, %v886_v31  ;;  %v903_v40 = vsel %vm871_vm4, %v2321_v25, %v887_v32  ;;  %v1002_v43 = vrot.slane %v900_v35, 1 }
  0x3d   : > { %v1003_v44 = vrot.slane %v901_v36, 1  ;;  %v1005_v45 = vrot.slane %v902_v38, 1  ;;  %vm1113_vm5 = vcmp.gt.f32.partialorder %v2366_v48, 0.0  ;;  %v1121_v54 = vmul.f32 %v2917_v4, %v2366_v48 }
  0x3e   : > { %2273 = vmatmul.msk.bf16.vlgmr.msrb.gmra.mxu3 %vm433_vm0, %v604_v41  ;;  %v714_v41 = vpack.c.bf16 %v709_v33, %v708_v9  ;;  %v889_v57 = vmul.f32 %v2917_v4, %v2323_v51  ;;  %v890_v59 = vmul.f32 %v2917_v4, %v2324_v52  ;;  %vm873_vm8 = vcmp.gt.f32.partialorder %v2323_v51, 0.0 }
  0x3f   : > { %v1004_v0 = vsel %vm379_vm1, %v1002_v43, %v1003_v44  ;;  %vm874_vm9 = vcmp.gt.f32.partialorder %v2324_v52, 0.0  ;;  %vm875_vm10 = vcmp.gt.f32.partialorder %v2325_v42, 0.0  ;;  %v916_v61 = vpack.c.bf16 %v902_v38, %v900_v35  ;;  %v2370_v38 = vld [vmem:[%s2931_s19 + $0x1f0] sm:$0xff]  ;;  %v2331_v43 = vld [vmem:[%s2931_s19 + $0x188] sm:$0x1] }
  0x40   : > { %v905_v37 = vsel %vm873_vm8, %v2323_v51, %v889_v57  ;;  %v906_v2 = vsel %vm874_vm9, %v2324_v52, %v890_v59  ;;  %vm1115_vm11 = vcmp.gt.f32.partialorder %v2368_v39, 0.0  ;;  %v1123_v17 = vmul.f32 %v2917_v4, %v2368_v39  ;;  %v2332_v44 = vld [vmem:[%s2931_s19 + $0x190] sm:$0xff] }
  0x41   : > { %v1009_v23 = vrot.slane %v905_v37, 1  ;;  %v1011_v7 = vrot.slane %v906_v2, 1  ;;  %v892_v24 = vmul.f32 %v2917_v4, %v2326_v12  ;;  %v893_v58 = vmul.f32 %v2917_v4, %v2327_v13 }
  0x42   : > { %v895_v20 = vmul.f32 %v2917_v4, %v2329_v15  ;;  %vm876_vm13 = vcmp.gt.f32.partialorder %v2326_v12, 0.0  ;;  %vm877_vm14 = vcmp.gt.f32.partialorder %v2327_v13, 0.0  ;;  %vm879_vm2 = vcmp.gt.f32.partialorder %v2329_v15, 0.0 }
  0x43   : > { %2257 = vmatmul.msk.bf16.vlgmr.msrb.gmra.mxu2 %vm433_vm0, %v528_v46  ;;  %v1006_v46 = vrot.slane %v903_v40, 1  ;;  %v1131_v25 = vsel %vm1115_vm11, %v2368_v39, %v1123_v17  ;;  %v908_v27 = vsel %vm876_vm13, %v2326_v12, %v892_v24  ;;  %v909_v28 = vsel %vm877_vm14, %v2327_v13, %v893_v58  ;;  %v2371_v40 = vld [vmem:[%s2931_s19 + $0x200] sm:$0xff] }
  0x44   : > { %2314 = vmatmul.msk.bf16.vlgmr.msrb.gmra.mxu1 %vm433_vm0, %v781_v49  ;;  %v2367_v49 = vld [vmem:[%s2931_s19 + $0x1c0] sm:$0xff]  ;;  %v911_v30 = vsel %vm879_vm2, %v2329_v15, %v895_v20  ;;  %v1014_v32 = vrot.slane %v908_v27, 1  ;;  %v1015_v33 = vrot.slane %v909_v28, 1  ;;  %vm1117_vm3 = vcmp.gt.f32.partialorder %v2370_v38, 0.0  ;;  %v2664_v20 = vld [vmem:[%s3713_s4 + $0x38] sm:$0xff] }
  0x45   : > { %v1007_v47 = vsel %vm379_vm1, %v1005_v45, %v1006_v46  ;;  %vm1114_vm6 = vcmp.gt.f32.partialorder %v2367_v49, 0.0  ;;  %v1122_v55 = vmul.f32 %v2917_v4, %v2367_v49  ;;  %v2333_v45 = vld [vmem:[%s2931_s19 + $0x198] sm:$0x1]  ;;  %vm1118_vm4 = vcmp.gt.f32.partialorder %v2371_v40, 0.0  ;;  %1364 = vmatpush.bf16.msra.mxu1 %v2664_v20 }
  0x46   : > { %v1034_v53 = vpack.c.bf16 %v1007_v47, %v1004_v0  ;;  %v1016_v35 = vsel %vm379_vm1, %v1014_v32, %v1015_v33  ;;  %v1125_v0 = vmul.f32 %v2917_v4, %v2370_v38  ;;  %v1126_v47 = vmul.f32 %v2917_v4, %v2371_v40 }
  0x47   : > { %2298 = vmatmul.msk.bf16.vlgmr.msrb.gmra.mxu0 %vm433_vm0, %v711_v50  ;;  %v2322_v50 = vld [vmem:[%s2931_s19 + $0x140] sm:$0xff]  ;;  %v899_v51 = vmul.f32 %v2917_v4, %v2333_v45  ;;  %vm883_vm8 = vcmp.gt.f32.partialorder %v2333_v45, 0.0  ;;  %vm1253_vm11 = vcmask 516096  }
  0x48   : > { %vm872_vm7 = vcmp.gt.f32.partialorder %v2322_v50, 0.0 }
  0x49   : > { %v915_v57 = vsel %vm883_vm8, %v2333_v45, %v899_v51 }
  0x4e   : > { %2274 = vmatmul.msk.bf16.gmra.mxu3 %vm433_vm0, %v605_v56  ;;  %v888_v56 = vmul.f32 %v2917_v4, %v2322_v50 }
  0x50   : > { %v904_v1 = vsel %vm872_vm7, %v2322_v50, %v888_v56  ;;  %v898_v50 = vmul.f32 %v2917_v4, %v2332_v44  ;;  %vm882_vm7 = vcmp.gt.f32.partialorder %v2332_v44, 0.0 }
  0x51   : > { %v917_v21 = vpack.c.bf16 %v906_v2, %v904_v1 }
  0x52   : > { %v914_v56 = vsel %vm882_vm7, %v2332_v44, %v898_v50  ;;  %v2668_v50 = vld [vmem:[%s3713_s4 + $0x58] sm:$0xff] }
  0x53   : > { %2258 = vmatmul.msk.bf16.gmra.mxu2 %vm433_vm0, %v529_v60  ;;  %v891_v60 = vmul.f32 %v2917_v4, %v2325_v42  ;;  %1515 = vmatpush.bf16.msrb.mxu3 %v2668_v50 }
  0x54   : > { %2315 = vmatmul.msk.bf16.gmra.mxu1 %vm433_vm0, %v782_v62  ;;  %v1129_v62 = vsel %vm1113_vm5, %v2366_v48, %v1121_v54 }
  0x55   : > { %v907_v3 = vsel %vm875_vm10, %v2325_v42, %v891_v60  ;;  %v1133_v42 = vsel %vm1117_vm3, %v2370_v38, %v1125_v0 }
  0x56   : > { %v1012_v8 = vrot.slane %v907_v3, 1 }
  0x57   : > { %2299 = vmatmul.msk.bf16.gmra.mxu0 %vm433_vm0, %v712_v63  ;;  %v1130_v63 = vsel %vm1114_vm6, %v2367_v49, %v1122_v55  ;;  %v897_v49 = vmul.f32 %v2917_v4, %v2331_v43  ;;  %vm881_vm6 = vcmp.gt.f32.partialorder %v2331_v43, 0.0 }
  0x58   : > { %v1137_v5 = vpack.c.bf16 %v1130_v63, %v1129_v62  ;;  %v1023_v63 = vrot.slane %v914_v56, 1 }
  0x59   : > { %v913_v55 = vsel %vm881_vm6, %v2331_v43, %v897_v49  ;;  %v2660_v49 = vld [vmem:[%s3713_s4 + $0x18] sm:$0xff] }
  0x5a   : > { %v1021_v62 = vrot.slane %v913_v55, 1  ;;  %1429 = vmatpush.bf16.msrb.mxu2 %v2660_v49  ;;  %v2809_v55 = vmov 0.0  }
  0x5b   : > { %1255 = vst.msk [vmem:[#allocation2 + $0x10] sm:$0x1] %vm1253_vm11, %v2809_v55 }
  0x5c   : > { %1256 = vst.msk [vmem:[#allocation2 + $0x20] sm:$0x1] %vm1253_vm11, %v2809_v55 }
  0x5d   : > { %1257 = vst.msk [vmem:[#allocation2 + $0x30] sm:$0x1] %vm1253_vm11, %v2809_v55 }
  0x5e   : > { %2275 = vmatmul.msk.bf16.gmra.mxu3 %vm433_vm0, %v606_v6  ;;  %v1008_v6 = vrot.slane %v904_v1, 1  ;;  %v1024_v1 = vrot.slane %v915_v57, 1  ;;  %1258 = vst.msk [vmem:[#allocation2 + $0x40] sm:$0x1] %vm1253_vm11, %v2809_v55 }
  0x5f   : > { %1259 = vst.msk [vmem:[#allocation2 + $0x50] sm:$0x1] %vm1253_vm11, %v2809_v55 }
  0x60   : > { %v1010_v9 = vsel %vm379_vm1, %v1008_v6, %v1009_v23  ;;  %v1025_v6 = vsel %vm379_vm1, %v1023_v63, %v1024_v1  ;;  %1260 = vst.msk [vmem:[#allocation2 + $0x60] sm:$0x1] %vm1253_vm11, %v2809_v55 }
  0x61   : > { %1261 = vst.msk [vmem:[#allocation2 + $0x70] sm:$0x1] %vm1253_vm11, %v2809_v55 }
  0x62   : > { %1262 = vst.msk [vmem:[#allocation2 + $0x80] sm:$0x1] %vm1253_vm11, %v2809_v55 }
  0x63   : > { %2259 = vmatmul.msk.bf16.gmra.mxu2 %vm433_vm0, %v530_v10  ;;  %v1013_v10 = vsel %vm379_vm1, %v1011_v7, %v1012_v8  ;;  %v2372_v7 = vld [vmem:[%s2931_s19 + $0x210] sm:$0xff]  ;;  %v2373_v8 = vld [vmem:[%s2931_s19 + $0x220] sm:$0xff]  ;;  %1265 = vst.msk [vmem:[#allocation2 + $0x19] sm:$0x1] %vm1253_vm11, %v2809_v55 }
  0x64   : > { %2316 = vmatmul.msk.bf16.gmra.mxu1 %vm433_vm0, %v783_v11  ;;  %v2369_v11 = vld [vmem:[%s2931_s19 + $0x1e0] sm:$0xff]  ;;  %v1035_v16 = vpack.c.bf16 %v1013_v10, %v1010_v9  ;;  %v1127_v39 = vmul.f32 %v2917_v4, %v2372_v7  ;;  %vm1119_vm9 = vcmp.gt.f32.partialorder %v2372_v7, 0.0  ;;  %vm1120_vm10 = vcmp.gt.f32.partialorder %v2373_v8, 0.0  ;;  %1266 = vst.msk [vmem:[#allocation2 + $0x29] sm:$0x1] %vm1253_vm11, %v2809_v55 }
  0x65   : > { %vm1116_vm12 = vcmp.gt.f32.partialorder %v2369_v11, 0.0  ;;  %v1124_v18 = vmul.f32 %v2917_v4, %v2369_v11  ;;  %1267 = vst.msk [vmem:[#allocation2 + $0x39] sm:$0x1] %vm1253_vm11, %v2809_v55 }
  0x66   : > { %1268 = vst.msk [vmem:[#allocation2 + $0x49] sm:$0x1] %vm1253_vm11, %v2809_v55 }
  0x67   : > { %2300 = vmatmul.msk.bf16.gmra.mxu0 %vm433_vm0, %v713_v14  ;;  %v2328_v14 = vld [vmem:[%s2931_s19 + $0x170] sm:$0xff]  ;;  %1269 = vst.msk [vmem:[#allocation2 + $0x59] sm:$0x1] %vm1253_vm11, %v2809_v55 }
  0x68   : > { %v894_v19 = vmul.f32 %v2917_v4, %v2328_v14  ;;  %vm878_vm15 = vcmp.gt.f32.partialorder %v2328_v14, 0.0  ;;  %1270 = vst.msk [vmem:[#allocation2 + $0x69] sm:$0x1] %vm1253_vm11, %v2809_v55 }
  0x69   : > { %1271 = vst.msk [vmem:[#allocation2 + $0x79] sm:$0x1] %vm1253_vm11, %v2809_v55 }
  0x6a   : > { %v910_v29 = vsel %vm878_vm15, %v2328_v14, %v894_v19  ;;  %v1135_v14 = vsel %vm1119_vm9, %v2372_v7, %v1127_v39  ;;  %1272 = vst.msk [vmem:[#allocation2 + $0x89] sm:$0x1] %vm1253_vm11, %v2809_v55 }
  0x6b   : > { %v918_v52 = vpack.c.bf16 %v910_v29, %v908_v27 }
  0x6e   : > { %2276 = vmatmul.msk.bf16.gmra.mxu3 %vm433_vm0, %v607_v26  ;;  %v1132_v26 = vsel %vm1116_vm12, %v2369_v11, %v1124_v18  ;;  %v1128_v11 = vmul.f32 %v2917_v4, %v2373_v8 }
  0x6f   : > { %v1138_v31 = vpack.c.bf16 %v1132_v26, %v1131_v25 }
  0x70   : > { %v1136_v15 = vsel %vm1120_vm10, %v2373_v8, %v1128_v11 }
  0x71   : > { %v1140_v17 = vpack.c.bf16 %v1136_v15, %v1135_v14 }
  0x73   : > { %2260 = vmatmul.msk.bf16.gmra.mxu2 %vm433_vm0, %v531_v22  ;;  %v1017_v22 = vrot.slane %v910_v29, 1 }
  0x74   : > { %2317 = vmatmul.msk.bf16.gmra.mxu1 %vm433_vm0, %v784_v34  ;;  %v1018_v34 = vrot.slane %v911_v30, 1  ;;  %v2663_v30 = vld [vmem:[%s3713_s4 + $0x30] sm:$0xff] }
  0x75   : > { %1365 = vmatpush.bf16.msra.mxu1 %v2663_v30 }
  0x76   : > { %v1019_v36 = vsel %vm379_vm1, %v1017_v22, %v1018_v34 }
  0x77   : > { %2301 = vmatmul.msk.bf16.gmra.mxu0 %vm433_vm0, %v714_v41  ;;  %v2330_v41 = vld [vmem:[%s2931_s19 + $0x180] sm:$0xff]  ;;  %v1036_v46 = vpack.c.bf16 %v1019_v36, %v1016_v35  ;;  %s2145_s19 = scalar_lea.hbm %s3716_s7, %s2693_s9 }
  0x78   : > { %v896_v48 = vmul.f32 %v2917_v4, %v2330_v41  ;;  %vm880_vm5 = vcmp.gt.f32.partialorder %v2330_v41, 0.0  ;;  %s2148_s16 = sshll.u32 %s2145_s19, 4  ;;  %s2149_s16 = int_to_ptr.hbm [resolvable:$true] %s2148_s16 }
  0x79   : > { %s2759_s17 = sshra.s32 %s2149_s16, 4  ;;  %s2760_s17 = int_to_ptr.hbm [resolvable:$true] %s2759_s17 }
  0x7a   : > { %v912_v54 = vsel %vm880_vm5, %v2330_v41, %v896_v48  ;;  %s2761_s18 = scalar_lea.hbm %s2760_s17, 64  ;;  %p2766_p0 = scmp.lt.s32.totalorder %s2760_s17, %s3716_s7 }
  0x7b   : > { %v919_v13 = vpack.c.bf16 %v914_v56, %v912_v54  ;;  %p2762_p11 = scmp.ne.s32.totalorder %s2760_s17, %s2761_s18  ;;  %p2767_p1 = scmp.lt.s32.totalorder %s2765_s23, %s2761_s18 }
  0x7d   : > { %p2763_p12 = pnand %p2762_p11, %p2890_p5  ;;  %p2768_p2 = por %p2767_p1, %p2766_p0 }
  0x7e   : > { %2362 = vmatmul.msk.bf16.vlgmr.msra.gmra.mxu3 %vm433_vm0, %v1034_v53  ;;  %v1134_v53 = vsel %vm1118_vm4, %v2371_v40, %v1126_v47  ;;  %v2662_v40 = vld [vmem:[%s3713_s4 + $0x28] sm:$0xff] }
  0x7f   : > { %v1139_v60 = vpack.c.bf16 %v1134_v53, %v1133_v42  ;;  %1366 = vmatpush.bf16.msra.mxu1 %v2662_v40  ;;  %v2659_v42 = vld [vmem:[%s3713_s4 + $0x10] sm:$0xff]  ;;  %v3358_v40 = vld [vmem:[%s3711_s2] ss:$0 sm:$0xff]  ;;  %p2764_p13 = pneg %p2763_p12 }
  0x80   : > { %v2667_v53 = vld [vmem:[%s3713_s4 + $0x50] sm:$0xff]  ;;  %1430 = vmatpush.bf16.msrb.mxu2 %v2659_v42 }
  0x81   : > { %1516 = vmatpush.bf16.msrb.mxu3 %v2667_v53  ;;  %p2769_p3 = pnand %p2768_p2, %p2764_p13 }
  0x83   : > { %2346 = vmatmul.msk.bf16.vlgmr.msra.gmra.mxu2 %vm433_vm0, %v916_v61  ;;  %v1020_v61 = vrot.slane %v912_v54, 1  ;;  %v2661_v54 = vld [vmem:[%s3713_s4 + $0x20] sm:$0xff] }
  0x84   : > { %1367 = vmatpush.bf16.msra.mxu1 %v2661_v54 }
  0x87   : > { %2386 = vmatmul.msk.bf16.vlgmr.msra.gmra.mxu0 %vm433_vm0, %v1137_v5  ;;  %v1022_v5 = vsel %vm379_vm1, %v1020_v61, %v1021_v62  ;;  %vm1248_vm1 = vcmask 517120   ;;  %v2672_v61 = vld [vmem:[%s3713_s4 + $0x78] sm:$0xff] }
  0x88   : > { %v1037_v9 = vpack.c.bf16 %v1025_v6, %v1022_v5  ;;  %1249 = vst.msk [vmem:[#allocation2 + $0x8] sm:$0x3] %vm1248_vm1, %v2809_v55  ;;  %1609 = vmatpush.bf16.msrb.mxu0 %v2672_v61  ;;  %v2657_v5 = vld [vmem:[%s3713_s4] sm:$0xff]  ;;  %v2671_v6 = vld [vmem:[%s3713_s4 + $0x70] sm:$0xff] }
  0x89   : > { %1252 = vst.msk [vmem:[#allocation2 + $0x98] sm:$0x3] %vm1248_vm1, %v2809_v55 }
  0x8a   : > { %1264 = vst.msk [vmem:[#allocation2 + $0x9] sm:$0x1] %vm1253_vm11, %v2809_v55 }
  0x8b   : > { %1273 = vst.msk [vmem:[#allocation2 + $0x99] sm:$0x1] %vm1253_vm11, %v2809_v55 }
  0x8c   : > { %1610 = vmatpush.bf16.msrb.mxu0 %v2671_v6 }
  0x8e   : > { %2363 = vmatmul.msk.bf16.gmra.mxu3 %vm433_vm0, %v1035_v16 }
  0x93   : > { %2347 = vmatmul.msk.bf16.gmra.mxu2 %vm433_vm0, %v917_v21 }
  0x97   : > { %2387 = vmatmul.msk.bf16.gmra.mxu0 %vm433_vm0, %v1138_v31 }
  0x9e   : > { %2364 = vmatmul.msk.bf16.gmra.mxu3 %vm433_vm0, %v1036_v46 }
  0xa1   : > { %v518_v59 = vpop.f32.mrf.mxu3  ;;  %v508_v31 = vpop.f32.mrf.mxu1 }
  0xa3   : > { %2348 = vmatmul.msk.bf16.gmra.mxu2 %vm433_vm0, %v918_v52 }
  0xa4   : > { %v3169_v37 = vpop.f32.mrf.mxu0 }
  0xa5   : > { %v509_v63 = vadd.f32 %v508_v31, %v3169_v37  ;;  %v2665_v37 = vld [vmem:[%s3713_s4 + $0x40] sm:$0xff] }
  0xa6   : > { %v465_v2 = vpop.f32.mrf.mxu2 }
  0xa7   : > { %2388 = vmatmul.msk.bf16.gmra.mxu0 %vm433_vm0, %v1139_v60  ;;  %v3172_v3 = vadd.f32 %v518_v59, %v465_v2  ;;  %v2658_v59 = vld [vmem:[%s3713_s4 + $0x8] sm:$0xff] }
  0xa8   : > { %v2666_v60 = vld [vmem:[%s3713_s4 + $0x48] sm:$0xff]  ;;  %1431 = vmatpush.bf16.msrb.mxu2 %v2658_v59 }
  0xa9   : > { %v3176_v23 = vpop.f32.mrf.mxu3  ;;  %v3221_v35 = vpop.f32.mrf.mxu1  ;;  %1517 = vmatpush.bf16.msrb.mxu3 %v2666_v60 }
  0xac   : > { %v3180_v10 = vpop.f32.mrf.mxu0  ;;  %1432 = vmatpush.bf16.msrb.mxu2 %v2657_v5 }
  0xad   : > { %1518 = vmatpush.bf16.msrb.mxu3 %v2665_v37 }
  0xae   : > { %v3184_v12 = vpop.f32.mrf.mxu2  ;;  %2365 = vmatmul.msk.bf16.gmra.mxu3 %vm433_vm0, %v1037_v9  ;;  %v2670_v9 = vld [vmem:[%s3713_s4 + $0x68] sm:$0xff] }
  0xaf   : > { %1611 = vmatpush.bf16.msrb.mxu0 %v2670_v9 }
  0xb1   : > { %v523_v16 = vpop.f32.mrf.mxu3  ;;  %v3234_v44 = vpop.f32.mrf.mxu1 }
  0xb3   : > { %2349 = vmatmul.msk.bf16.gmra.mxu2 %vm433_vm0, %v919_v13  ;;  %v511_v13 = vadd.f32 %v3221_v35, %v3180_v10  ;;  %v2676_v10 = vld [vmem:[%s3713_s4 + $0x98] sm:$0xff] }
  0xb4   : > { %v3188_v18 = vpop.f32.mrf.mxu0  ;;  %1703 = vmatpush.bf16.msrb.mxu1 %v2676_v10 }
  0xb6   : > { %v470_v24 = vpop.f32.mrf.mxu2 }
  0xb7   : > { %2389 = vmatmul.msk.bf16.gmra.mxu0 %vm433_vm0, %v1140_v17  ;;  %v3191_v58 = vadd.f32 %v523_v16, %v470_v24  ;;  %vm1246_vm0 = vcmask 523264   ;;  %v2669_v17 = vld [vmem:[%s3713_s4 + $0x60] sm:$0xff] }
  0xb8   : > { %1247 = vst.msk [vmem:[#allocation2] sm:$0xff] %vm1246_vm0, %v2809_v55  ;;  %1612 = vmatpush.bf16.msrb.mxu0 %v2669_v17 }
  0xb9   : > { %v3193_v4 = vpop.f32.mrf.mxu3  ;;  %v3242_v47 = vpop.f32.mrf.mxu1  ;;  %1251 = vst.msk [vmem:[#allocation2 + $0x90] sm:$0xff] %vm1246_vm0, %v2809_v55 }
  0xba   : > { %1254 = vst.msk [vmem:[#allocation2] sm:$0x1] %vm1253_vm11, %v2809_v55 }
  0xbb   : > { %1263 = vst.msk [vmem:[#allocation2 + $0x90] sm:$0x1] %vm1253_vm11, %v2809_v55 }
  0xbc   : > { %v3195_v19 = vpop.f32.mrf.mxu0 }
  0xbd   : > { %v516_v54 = vadd.f32 %v3242_v47, %v3195_v19 }
  0xbe   : > { %v3200_v21 = vpop.f32.mrf.mxu2 }
  0xc1   : > { %v3202_v25 = vpop.f32.mrf.mxu3  ;;  %v823_v56 = vpop.f32.mrf.mxu1 }
  0xc4   : > { %v3204_v26 = vpop.f32.mrf.mxu0 }
  0xc6   : > { %v570_v27 = vpop.f32.mrf.mxu2 }
  0xc7   : > { %v590_v1 = vadd.f32 %v570_v27, %v509_v63  ;;  %v514_v27 = vadd.f32 %v3234_v44, %v3188_v18 }
  0xc9   : > { %v3206_v28 = vpop.f32.mrf.mxu3  ;;  %v666_v8 = vadd.f32 %v3202_v25, %v590_v1  ;;  %v825_v39 = vpop.f32.mrf.mxu1 }
  0xcb   : > { %v773_v14 = vadd.f32 %v3204_v26, %v666_v8 }
  0xcc   : > { %v3208_v29 = vpop.f32.mrf.mxu0 }
  0xcd   : > { %v843_v20 = vadd.f32 %v823_v56, %v773_v14  ;;  %v1454_v14 = vld [vmem:[#allocation2 + $0x2] sm:$0xff] }
  0xce   : > { %v3213_v32 = vpop.f32.mrf.mxu2 }
  0xcf   : > { %v591_v15 = vadd.f32 %v3213_v32, %v511_v13  ;;  %v1283_v13 = vld [vmem:[#allocation2] sm:$0xff] }
  0xd1   : > { %v3215_v33 = vpop.f32.mrf.mxu3  ;;  %v667_v25 = vadd.f32 %v3206_v28, %v591_v15  ;;  %v828_v31 = vpop.f32.mrf.mxu1 }
  0xd3   : > { %v774_v28 = vadd.f32 %v3208_v29, %v667_v25  ;;  %v3367_v29 = vld [vmem:[%s3715_s6] ss:$0 sm:$0xff] }
  0xd4   : > { %v3217_v22 = vpop.f32.mrf.mxu0 }
  0xd5   : > { %v844_v44 = vadd.f32 %v825_v39, %v774_v28  ;;  %v1303_v39 = vld [vmem:[#allocation2 + $0x1] sm:$0xff] }
  0xd6   : > { %v3219_v34 = vpop.f32.mrf.mxu2 }
  0xd7   : > { %v592_v32 = vadd.f32 %v3219_v34, %v514_v27 }
  0xd9   : > { %v3223_v36 = vpop.f32.mrf.mxu3  ;;  %v668_v50 = vadd.f32 %v3215_v33, %v592_v32  ;;  %v830_v5 = vpop.f32.mrf.mxu1  ;;  %v2675_v33 = vld [vmem:[%s3713_s4 + $0x90] sm:$0xff] }
  0xda   : > { %1704 = vmatpush.bf16.msrb.mxu1 %v2675_v33 }
  0xdb   : > { %v775_v59 = vadd.f32 %v3217_v22, %v668_v50 }
  0xdc   : > { %v3225_v38 = vpop.f32.mrf.mxu0 }
  0xdd   : > { %v845_v47 = vadd.f32 %v828_v31, %v775_v59 }
  0xde   : > { %v3230_v41 = vpop.f32.mrf.mxu2 }
  0xdf   : > { %v593_v60 = vadd.f32 %v3230_v41, %v516_v54 }
  0xe1   : > { %v3232_v43 = vpop.f32.mrf.mxu3  ;;  %v669_v6 = vadd.f32 %v3223_v36, %v593_v60 }
  0xe3   : > { %v776_v15 = vadd.f32 %v3225_v38, %v669_v6  ;;  %v833_v38 = vpop.f32.mrf.mxu1 }
  0xe4   : > { %v3236_v45 = vpop.f32.mrf.mxu0 }
  0xe6   : > { %v3238_v46 = vpop.f32.mrf.mxu2 }
  0xe9   : > { %v3240_v0 = vpop.f32.mrf.mxu3 }
  0xeb   : > { %v835_v60 = vpop.f32.mrf.mxu1 }
  0xec   : > { %v3244_v48 = vpop.f32.mrf.mxu0 }
  0xee   : > { %v3252_v51 = vpop.f32.mrf.mxu2 }
  0xf1   : > { %v3254_v52 = vpop.f32.mrf.mxu3 }
  0xf4   : > { %v3267_v57 = vpop.f32.mrf.mxu0 }
  0xf6   : > { %v3281_v62 = vpop.f32.mrf.mxu2 }
  0xf9   : > { %v3289_v2 = vpop.f32.mrf.mxu3 }
  0xfc   : > { %v3306_v7 = vpop.f32.mrf.mxu0 }
  0xfe   : > { %v3316_v11 = vpop.f32.mrf.mxu2 }
 0x101   : > { %v1076_v16 = vpop.f32.mrf.mxu3 }
 0x104   : > { %v1179_v24 = vpop.f32.mrf.mxu0 }
 0x106   : > { %v958_v26 = vpop.f32.mrf.mxu2 }
 0x107   : > { %v978_v30 = vadd.f32 %v958_v26, %v843_v20 }
 0x109   : > { %v1096_v35 = vadd.f32 %v1076_v16, %v978_v30  ;;  %v1078_v49 = vpop.f32.mrf.mxu3  ;;  %v594_v16 = vadd.f32 %v3238_v46, %v3172_v3  ;;  %v846_v3 = vadd.f32 %v830_v5, %v776_v15  ;;  %v2673_v15 = vld [vmem:[%s3713_s4 + $0x80] sm:$0xff] }
 0x10b   : > { %v1199_v18 = vadd.f32 %v1179_v24, %v1096_v35  ;;  %v670_v46 = vadd.f32 %v3232_v43, %v594_v16  ;;  %v2680_v16 = vld [vmem:[%s3713_s4 + $0xb8] sm:$0xff] }
 0x10c   : > { %v1181_v34 = vpop.f32.mrf.mxu0  ;;  %1797 = vmatpush.bf16.msra.mxu2 %v2680_v16 }
 0x10d   : > { %v1211_v42 = vadd.f32 %v3358_v40, %v1199_v18 }
 0x10e   : > { %v960_v53 = vpop.f32.mrf.mxu2 }
 0x10f   : > { %vm1219_vm12 = vcmp.gt.f32.partialorder %v1211_v42, 0.0  ;;  %v1230_v56 = vmul.f32 %v3367_v29, %v1211_v42  ;;  %v979_v55 = vadd.f32 %v960_v53, %v844_v44  ;;  %v777_v44 = vadd.f32 %v3236_v45, %v670_v46 }
 0x111   : > { %v1238_v61 = vsel %vm1219_vm12, %v1211_v42, %v1230_v56  ;;  %v1097_v63 = vadd.f32 %v1078_v49, %v979_v55  ;;  %v1081_v1 = vpop.f32.mrf.mxu3  ;;  %v521_v49 = vadd.f32 %v3176_v23, %v3184_v12  ;;  %v2674_v55 = vld [vmem:[%s3713_s4 + $0x88] sm:$0xff]  ;;  %v847_v59 = vadd.f32 %v833_v38, %v777_v44 }
 0x112   : > { %1275 = vst.msk [vmem:[#allocation2 + $0x11] sm:$0xff] %vm1246_vm0, %v1238_v61  ;;  %1705 = vmatpush.bf16.msrb.mxu1 %v2674_v55 }
 0x113   : > { %v1200_v37 = vadd.f32 %v1181_v34, %v1097_v63  ;;  %v595_v50 = vadd.f32 %v3252_v51, %v521_v49 }
 0x114   : > { %v1184_v19 = vpop.f32.mrf.mxu0 }
 0x115   : > { %v1212_v22 = vadd.f32 %v3358_v40, %v1200_v37  ;;  %v671_v45 = vadd.f32 %v3240_v0, %v595_v50 }
 0x116   : > { %v963_v8 = vpop.f32.mrf.mxu2  ;;  %1706 = vmatpush.bf16.msrb.mxu1 %v2673_v15 }
 0x117   : > { %vm1220_vm13 = vcmp.gt.f32.partialorder %v1212_v22, 0.0  ;;  %v1231_v41 = vmul.f32 %v3367_v29, %v1212_v22  ;;  %v980_v9 = vadd.f32 %v963_v8, %v845_v47  ;;  %v778_v37 = vadd.f32 %v3244_v48, %v671_v45 }
 0x119   : > { %v1239_v17 = vsel %vm1220_vm13, %v1212_v22, %v1231_v41  ;;  %v1098_v10 = vadd.f32 %v1081_v1, %v980_v9  ;;  %v1083_v24 = vpop.f32.mrf.mxu3  ;;  %v3386_v20 = vld [vmem:[#allocation2 + $0x11] sm:$0xff] }
 0x11a   : > { %v1284_v36 = vld [vmem:[#allocation2 + $0x10] sm:$0xff]  ;;  %1276 = vst.msk [vmem:[#allocation2 + $0x21] sm:$0xff] %vm1246_vm0, %v1239_v17  ;;  %v1311_v26 = vpack.c.bf16 %v3386_v20, %v1303_v39  ;;  %v848_v39 = vadd.f32 %v835_v60, %v778_v37  ;;  %v2684_v17 = vld [vmem:[%s3713_s4 + $0xd8] sm:$0xff] }
 0x11b   : > { %v3388_v25 = vld [vmem:[#allocation2 + $0x12] sm:$0xff]  ;;  %v1291_v27 = vpack.c.bf16 %v1284_v36, %v1283_v13  ;;  %v1201_v31 = vadd.f32 %v1184_v19, %v1098_v10  ;;  %v596_v19 = vadd.f32 %v3281_v62, %v3191_v58  ;;  %1892 = vmatpush.bf16.msra.mxu3 %v2684_v17 }
 0x11c   : > { %v1462_v30 = vpack.c.bf16 %v3388_v25, %v1454_v14  ;;  %v1186_v28 = vpop.f32.mrf.mxu0  ;;  %2414 = vmatmul.msk.bf16.vlgmr.msra.gmra.mxu1 %vm1246_vm0, %v1311_v26 }
 0x11d   : > { %2434 = vmatmul.msk.bf16.vlgmr.msrb.gmra.mxu2 %vm1246_vm0, %v1291_v27  ;;  %v1213_v32 = vadd.f32 %v3358_v40, %v1201_v31  ;;  %v672_v13 = vadd.f32 %v3254_v52, %v596_v19  ;;  %v526_v52 = vadd.f32 %v3193_v4, %v3200_v21  ;;  %v2679_v27 = vld [vmem:[%s3713_s4 + $0xb0] sm:$0xff] }
 0x11e   : > { %2462 = vmatmul.msk.bf16.vlgmr.msrb.gmra.mxu3 %vm1246_vm0, %v1462_v30  ;;  %v965_v35 = vpop.f32.mrf.mxu2  ;;  %v838_v30 = vpop.f32.mrf.mxu1  ;;  %v2683_v31 = vld [vmem:[%s3713_s4 + $0xd0] sm:$0xff]  ;;  %1798 = vmatpush.bf16.msra.mxu2 %v2679_v27 }
 0x11f   : > { %vm1221_vm14 = vcmp.gt.f32.partialorder %v1213_v32, 0.0  ;;  %v1232_v18 = vmul.f32 %v3367_v29, %v1213_v32  ;;  %v981_v34 = vadd.f32 %v965_v35, %v846_v3  ;;  %v779_v38 = vadd.f32 %v3267_v57, %v672_v13  ;;  %1893 = vmatpush.bf16.msra.mxu3 %v2683_v31  ;;  %v2678_v35 = vld [vmem:[%s3713_s4 + $0xa8] sm:$0xff] }
 0x120   : > { %v597_v4 = vadd.f32 %v3316_v11, %v526_v52  ;;  %v2682_v57 = vld [vmem:[%s3713_s4 + $0xc8] sm:$0xff]  ;;  %v2688_v11 = vld [vmem:[%s3713_s4 + $0xf8] sm:$0xff] }
 0x121   : > { %v1240_v42 = vsel %vm1221_vm14, %v1213_v32, %v1232_v18  ;;  %v1099_v53 = vadd.f32 %v1083_v24, %v981_v34  ;;  %v1549_v54 = vld [vmem:[#allocation2 + $0x20] sm:$0xff]  ;;  %v1086_v43 = vpop.f32.mrf.mxu3  ;;  %v849_v49 = vadd.f32 %v838_v30, %v779_v38  ;;  %1986 = vmatpush.bf16.msra.mxu0 %v2688_v11 }
 0x122   : > { %1277 = vst.msk [vmem:[#allocation2 + $0x31] sm:$0xff] %vm1246_vm0, %v1240_v42  ;;  %v1556_v56 = vpack.c.bf16 %v1549_v54, %v1284_v36  ;;  %v3411_v5 = vld [vmem:[#allocation2 + $0x21] sm:$0xff]  ;;  %v673_v18 = vadd.f32 %v3289_v2, %v597_v4  ;;  %v2687_v42 = vld [vmem:[%s3713_s4 + $0xf0] sm:$0xff]  ;;  %1799 = vmatpush.bf16.msra.mxu2 %v2678_v35 }
 0x123   : > { %v1202_v23 = vadd.f32 %v1186_v28, %v1099_v53  ;;  %v3413_v33 = vld [vmem:[#allocation2 + $0x22] sm:$0xff]  ;;  %1894 = vmatpush.bf16.msra.mxu3 %v2682_v57  ;;  %v1650_v57 = vpack.c.bf16 %v3411_v5, %v3386_v20 }
 0x124   : > { %v1189_v12 = vpop.f32.mrf.mxu0  ;;  %2490 = vmatmul.msk.bf16.vlgmr.msrb.gmra.mxu0 %vm1246_vm0, %v1556_v56  ;;  %v1744_v11 = vpack.c.bf16 %v3413_v33, %v3388_v25 }
 0x125   : > { %v1214_v51 = vadd.f32 %v3358_v40, %v1202_v23  ;;  %v780_v23 = vadd.f32 %v3306_v7, %v673_v18  ;;  %v2681_v7 = vld [vmem:[%s3713_s4 + $0xc0] sm:$0xff]  ;;  %1987 = vmatpush.bf16.msra.mxu0 %v2687_v42 }
 0x126   : > { %v968_v61 = vpop.f32.mrf.mxu2 }
 0x127   : > { %vm1222_vm15 = vcmp.gt.f32.partialorder %v1214_v51, 0.0  ;;  %v1233_v63 = vmul.f32 %v3367_v29, %v1214_v51  ;;  %v982_v1 = vadd.f32 %v968_v61, %v847_v59  ;;  %v840_v61 = vpop.f32.mrf.mxu1  ;;  %1895 = vmatpush.bf16.msra.mxu3 %v2681_v7 }
 0x129   : > { %v1241_v47 = vsel %vm1222_vm15, %v1214_v51, %v1233_v63  ;;  %v1100_v6 = vadd.f32 %v1086_v43, %v982_v1  ;;  %v3418_v0 = vld [vmem:[#allocation2 + $0x31] sm:$0xff]  ;;  %v1088_v62 = vpop.f32.mrf.mxu3  ;;  %v2677_v43 = vld [vmem:[%s3713_s4 + $0xa0] sm:$0xff] }
 0x12a   : > { %v1286_v22 = vld [vmem:[#allocation2 + $0x30] sm:$0xff]  ;;  %1278 = vst.msk [vmem:[#allocation2 + $0x41] sm:$0xff] %vm1246_vm0, %v1241_v47  ;;  %v3425_v41 = vpack.c.bf16 %v3418_v0, %v3411_v5  ;;  %1800 = vmatpush.bf16.msra.mxu2 %v2677_v43  ;;  %v850_v47 = vadd.f32 %v840_v61, %v780_v23  ;;  %v2689_v5 = vld [vmem:[%s3713_s4 + $0x100] sm:$0xff] }
 0x12b   : > { %v3420_v8 = vld [vmem:[#allocation2 + $0x32] sm:$0xff]  ;;  %v3427_v9 = vpack.c.bf16 %v1286_v22, %v1549_v54  ;;  %v1203_v58 = vadd.f32 %v1189_v12, %v1100_v6 }
 0x12c   : > { %v3431_v48 = vpack.c.bf16 %v3420_v8, %v3413_v33  ;;  %2415 = vmatmul.msk.bf16.gmra.mxu1 %vm1246_vm0, %v3425_v41  ;;  %v1191_v10 = vpop.f32.mrf.mxu0  ;;  %v2026_v61 = vld [vmem:[#allocation2 + $0x92] sm:$0xff] }
 0x12d   : > { %2435 = vmatmul.msk.bf16.gmra.mxu2 %vm1246_vm0, %v3427_v9  ;;  %v1215_v14 = vadd.f32 %v3358_v40, %v1203_v58  ;;  %v2686_v58 = vld [vmem:[%s3713_s4 + $0xe8] sm:$0xff] }
 0x12e   : > { %2463 = vmatmul.msk.bf16.gmra.mxu3 %vm1246_vm0, %v3431_v48  ;;  %v970_v24 = vpop.f32.mrf.mxu2  ;;  %1988 = vmatpush.bf16.msra.mxu0 %v2686_v58 }
 0x12f   : > { %vm1223_vm2 = vcmp.gt.f32.partialorder %v1215_v14, 0.0  ;;  %v1234_v36 = vmul.f32 %v3367_v29, %v1215_v14  ;;  %v983_v26 = vadd.f32 %v970_v24, %v848_v39 }
 0x131   : > { %v1242_v21 = vsel %vm1223_vm2, %v1215_v14, %v1234_v36  ;;  %v1101_v28 = vadd.f32 %v1088_v62, %v983_v26  ;;  %v1551_v3 = vld [vmem:[#allocation2 + $0x40] sm:$0xff]  ;;  %v1091_v44 = vpop.f32.mrf.mxu3 }
 0x132   : > { %1279 = vst.msk [vmem:[#allocation2 + $0x51] sm:$0xff] %vm1246_vm0, %v1242_v21  ;;  %v1557_v46 = vpack.c.bf16 %v1551_v3, %v1286_v22  ;;  %v3481_v2 = vld [vmem:[#allocation2 + $0x41] sm:$0xff]  ;;  %v2692_v22 = vld [vmem:[%s3713_s4 + $0x118] sm:$0xff] }
 0x133   : > { %v1204_v32 = vadd.f32 %v1191_v10, %v1101_v28  ;;  %v3483_v55 = vld [vmem:[#allocation2 + $0x42] sm:$0xff]  ;;  %2080 = vmatpush.bf16.msra.mxu1 %v2692_v22  ;;  %v1651_v20 = vpack.c.bf16 %v3481_v2, %v3418_v0 }
 0x134   : > { %2491 = vmatmul.msk.bf16.gmra.mxu0 %vm1246_vm0, %v1557_v46  ;;  %v1194_v56 = vpop.f32.mrf.mxu0  ;;  %v2685_v14 = vld [vmem:[%s3713_s4 + $0xe0] sm:$0xff]  ;;  %v1745_v25 = vpack.c.bf16 %v3483_v55, %v3420_v8 }
 0x135   : > { %v1216_v34 = vadd.f32 %v3358_v40, %v1204_v32  ;;  %1989 = vmatpush.bf16.msra.mxu0 %v2685_v14 }
 0x136   : > { %v973_v50 = vpop.f32.mrf.mxu2 }
 0x137   : > { %vm1224_vm3 = vcmp.gt.f32.partialorder %v1216_v34, 0.0  ;;  %v1235_v53 = vmul.f32 %v3367_v29, %v1216_v34  ;;  %v984_v54 = vadd.f32 %v973_v50, %v849_v49  ;;  %v2690_v49 = vld [vmem:[%s3713_s4 + $0x108] sm:$0xff]  ;;  %v1932_v50 = vld [vmem:[#allocation2 + $0x91] sm:$0xff] }
 0x139   : > { %v1243_v12 = vsel %vm1224_vm3, %v1216_v34, %v1235_v53  ;;  %v1102_v59 = vadd.f32 %v1091_v44, %v984_v54  ;;  %v3486_v45 = vld [vmem:[#allocation2 + $0x51] sm:$0xff]  ;;  %v1093_v15 = vpop.f32.mrf.mxu3 }
 0x13a   : > { %v1288_v51 = vld [vmem:[#allocation2 + $0x50] sm:$0xff]  ;;  %1280 = vst.msk [vmem:[#allocation2 + $0x61] sm:$0xff] %vm1246_vm0, %v1243_v12  ;;  %v3493_v63 = vpack.c.bf16 %v3486_v45, %v3481_v2 }
 0x13b   : > { %v3488_v60 = vld [vmem:[#allocation2 + $0x52] sm:$0xff]  ;;  %v3495_v1 = vpack.c.bf16 %v1288_v51, %v1551_v3  ;;  %v1205_v19 = vadd.f32 %v1194_v56, %v1102_v59 }
 0x13c   : > { %v3499_v37 = vpack.c.bf16 %v3488_v60, %v3483_v55  ;;  %2416 = vmatmul.msk.bf16.gmra.mxu1 %vm1246_vm0, %v3493_v63  ;;  %v1196_v24 = vpop.f32.mrf.mxu0 }
 0x13d   : > { %2436 = vmatmul.msk.bf16.gmra.mxu2 %vm1246_vm0, %v3495_v1  ;;  %v1217_v6 = vadd.f32 %v3358_v40, %v1205_v19 }
 0x13e   : > { %2464 = vmatmul.msk.bf16.gmra.mxu3 %vm1246_vm0, %v3499_v37  ;;  %v975_v62 = vpop.f32.mrf.mxu2 }
 0x13f   : > { %vm1225_vm4 = vcmp.gt.f32.partialorder %v1217_v6, 0.0  ;;  %v1236_v39 = vmul.f32 %v3367_v29, %v1217_v6  ;;  %v985_v13 = vadd.f32 %v975_v62, %v850_v47 }
 0x141   : > { %v1244_v16 = vsel %vm1225_vm4, %v1217_v6, %v1236_v39  ;;  %v1103_v17 = vadd.f32 %v1093_v15, %v985_v13  ;;  %v1553_v10 = vld [vmem:[#allocation2 + $0x60] sm:$0xff] }
 0x142   : > { %1281 = vst.msk [vmem:[#allocation2 + $0x71] sm:$0xff] %vm1246_vm0, %v1244_v16  ;;  %v1558_v52 = vpack.c.bf16 %v1553_v10, %v1288_v51  ;;  %v1309_v30 = vld [vmem:[#allocation2 + $0x61] sm:$0xff] }
 0x143   : > { %v1206_v36 = vadd.f32 %v1196_v24, %v1103_v17  ;;  %v1460_v31 = vld [vmem:[#allocation2 + $0x62] sm:$0xff]  ;;  %v1652_v33 = vpack.c.bf16 %v1309_v30, %v3486_v45 }
 0x144   : > { %2492 = vmatmul.msk.bf16.gmra.mxu0 %vm1246_vm0, %v1558_v52  ;;  %v1746_v0 = vpack.c.bf16 %v1460_v31, %v3488_v60 }
 0x145   : > { %v1218_v26 = vadd.f32 %v3358_v40, %v1206_v36  ;;  %v2691_v40 = vld [vmem:[%s3713_s4 + $0x110] sm:$0xff] }
 0x146   : > { %2081 = vmatpush.bf16.msra.mxu1 %v2691_v40 }
 0x147   : > { %vm1226_vm5 = vcmp.gt.f32.partialorder %v1218_v26, 0.0  ;;  %v1237_v27 = vmul.f32 %v3367_v29, %v1218_v26 }
 0x149   : > { %v1245_v38 = vsel %vm1226_vm5, %v1218_v26, %v1237_v27  ;;  %v1310_v4 = vld [vmem:[#allocation2 + $0x71] sm:$0xff] }
 0x14a   : > { %v1290_v21 = vld [vmem:[#allocation2 + $0x70] sm:$0xff]  ;;  %1282 = vst.msk [vmem:[#allocation2 + $0x81] sm:$0xff] %vm1246_vm0, %v1245_v38  ;;  %v1314_v3 = vpack.c.bf16 %v1310_v4, %v1309_v30  ;;  %2082 = vmatpush.bf16.msra.mxu1 %v2690_v49 }
 0x14b   : > { %v1461_v28 = vld [vmem:[#allocation2 + $0x72] sm:$0xff]  ;;  %v1294_v46 = vpack.c.bf16 %v1290_v21, %v1553_v10 }
 0x14c   : > { %v1465_v32 = vpack.c.bf16 %v1461_v28, %v1460_v31  ;;  %2417 = vmatmul.msk.bf16.gmra.mxu1 %vm1246_vm0, %v1314_v3 }
 0x14d   : > { %2437 = vmatmul.msk.bf16.gmra.mxu2 %vm1246_vm0, %v1294_v46 }
 0x14e   : > { %2465 = vmatmul.msk.bf16.gmra.mxu3 %vm1246_vm0, %v1465_v32  ;;  %2083 = vmatpush.bf16.msra.mxu1 %v2689_v5 }
 0x151   : > { %v1555_v29 = vld [vmem:[#allocation2 + $0x80] sm:$0xff] }
 0x152   : > { %v1559_v35 = vpack.c.bf16 %v1555_v29, %v1290_v21  ;;  %v1649_v8 = vld [vmem:[#allocation2 + $0x81] sm:$0xff] }
 0x153   : > { %v1653_v18 = vpack.c.bf16 %v1649_v8, %v1310_v4  ;;  %v1936_v42 = vpack.c.bf16 %v1932_v50, %v1649_v8 }
 0x154   : > { %2493 = vmatmul.msk.bf16.gmra.mxu0 %vm1246_vm0, %v1559_v35 }
 0x15c   : > { %2518 = vmatmul.msk.bf16.vlgmr.msrb.gmra.mxu1 %vm1246_vm0, %v1650_v57 }
 0x15d   : > { %2546 = vmatmul.msk.bf16.vlgmr.msra.gmra.mxu2 %vm1246_vm0, %v1744_v11 }
 0x15e   : > { %2574 = vmatmul.msk.bf16.vlgmr.msra.gmra.mxu3 %vm1246_vm0, %v3427_v9  ;;  %v1838_v9 = vld [vmem:[#allocation2 + $0x90] sm:$0xff] }
 0x15f   : > { %v1842_v44 = vpack.c.bf16 %v1838_v9, %v1555_v29 }
 0x164   : > { %2602 = vmatmul.msk.bf16.vlgmr.msra.gmra.mxu0 %vm1246_vm0, %v3425_v41  ;;  %v1743_v41 = vld [vmem:[#allocation2 + $0x82] sm:$0xff] }
 0x165   : > { %v1747_v34 = vpack.c.bf16 %v1743_v41, %v1461_v28 }
 0x16c   : > { %2519 = vmatmul.msk.bf16.gmra.mxu1 %vm1246_vm0, %v1651_v20 }
 0x16d   : > { %2547 = vmatmul.msk.bf16.gmra.mxu2 %vm1246_vm0, %v1745_v25 }
 0x16e   : > { %2575 = vmatmul.msk.bf16.gmra.mxu3 %vm1246_vm0, %v3495_v1 }
 0x174   : > { %2603 = vmatmul.msk.bf16.gmra.mxu0 %vm1246_vm0, %v3493_v63 }
 0x17c   : > { %2520 = vmatmul.msk.bf16.gmra.mxu1 %vm1246_vm0, %v1652_v33 }
 0x17d   : > { %2548 = vmatmul.msk.bf16.gmra.mxu2 %vm1246_vm0, %v1746_v0 }
 0x17e   : > { %2576 = vmatmul.msk.bf16.gmra.mxu3 %vm1246_vm0, %v1294_v46 }
 0x184   : > { %2604 = vmatmul.msk.bf16.gmra.mxu0 %vm1246_vm0, %v1314_v3 }
 0x18c   : > { %2521 = vmatmul.msk.bf16.gmra.mxu1 %vm1246_vm0, %v1653_v18 }
 0x18d   : > { %2549 = vmatmul.msk.bf16.gmra.mxu2 %vm1246_vm0, %v1747_v34 }
 0x18e   : > { %2577 = vmatmul.msk.bf16.gmra.mxu3 %vm1246_vm0, %v1842_v44 }
 0x194   : > { %2605 = vmatmul.msk.bf16.gmra.mxu0 %vm1246_vm0, %v1936_v42  ;;  %v3625_v42 = vld [vmem:[%s3714_s5] ss:$0 sm:$0xff] }
 0x199   : > { %v1369_v53 = vpop.f32.mrf.mxu1 }
 0x19c   : > { %2630 = vmatmul.msk.bf16.vlgmr.msra.gmra.mxu1 %vm1246_vm0, %v3431_v48 }
 0x1a0   : > { %v1434_v56 = vpop.f32.mrf.mxu2 }
 0x1a1   : > { %v1371_v54 = vpop.f32.mrf.mxu1  ;;  %v1520_v55 = vpop.f32.mrf.mxu3  ;;  %v1435_v28 = vadd.f32 %v1434_v56, %v1369_v53 }
 0x1a2   : > { %v1614_v23 = vpop.f32.mrf.mxu0 }
 0x1a3   : > { %v1540_v46 = vadd.f32 %v1520_v55, %v1435_v28 }
 0x1a5   : > { %v1634_v35 = vadd.f32 %v1614_v23, %v1540_v46 }
 0x1a8   : > { %v1436_v12 = vpop.f32.mrf.mxu2 }
 0x1a9   : > { %v1374_v43 = vpop.f32.mrf.mxu1  ;;  %v1522_v45 = vpop.f32.mrf.mxu3  ;;  %v1437_v57 = vadd.f32 %v1436_v12, %v1371_v54 }
 0x1aa   : > { %v1616_v60 = vpop.f32.mrf.mxu0 }
 0x1ab   : > { %v1541_v20 = vadd.f32 %v1522_v45, %v1437_v57 }
 0x1ac   : > { %2631 = vmatmul.msk.bf16.gmra.mxu1 %vm1246_vm0, %v3499_v37  ;;  %v2030_v37 = vpack.c.bf16 %v2026_v61, %v1743_v41 }
 0x1ad   : > { %v1635_v8 = vadd.f32 %v1616_v60, %v1541_v20 }
 0x1b0   : > { %v1439_v48 = vpop.f32.mrf.mxu2 }
 0x1b1   : > { %v3573_v2 = vpop.f32.mrf.mxu1  ;;  %v1525_v63 = vpop.f32.mrf.mxu3  ;;  %v1440_v41 = vadd.f32 %v1439_v48, %v1374_v43 }
 0x1b2   : > { %v1619_v7 = vpop.f32.mrf.mxu0 }
 0x1b3   : > { %v1542_v34 = vadd.f32 %v1525_v63, %v1440_v41 }
 0x1b5   : > { %v1636_v55 = vadd.f32 %v1619_v7, %v1542_v34 }
 0x1b8   : > { %v1441_v19 = vpop.f32.mrf.mxu2 }
 0x1b9   : > { %v3575_v59 = vpop.f32.mrf.mxu1  ;;  %v1527_v6 = vpop.f32.mrf.mxu3  ;;  %v1442_v23 = vadd.f32 %v1441_v19, %v3573_v2 }
 0x1ba   : > { %v3585_v22 = vpop.f32.mrf.mxu0 }
 0x1bb   : > { %v1543_v61 = vadd.f32 %v1527_v6, %v1442_v23 }
 0x1bc   : > { %2632 = vmatmul.msk.bf16.gmra.mxu1 %vm1246_vm0, %v1465_v32 }
 0x1bd   : > { %v1637_v2 = vadd.f32 %v3585_v22, %v1543_v61 }
 0x1c0   : > { %v3587_v58 = vpop.f32.mrf.mxu2 }
 0x1c1   : > { %v3578_v51 = vpop.f32.mrf.mxu1  ;;  %v3589_v39 = vpop.f32.mrf.mxu3  ;;  %v1445_v19 = vadd.f32 %v3587_v58, %v3575_v59 }
 0x1c2   : > { %v3591_v13 = vpop.f32.mrf.mxu0 }
 0x1c3   : > { %v1544_v6 = vadd.f32 %v3589_v39, %v1445_v19 }
 0x1c5   : > { %v1638_v22 = vadd.f32 %v3591_v13, %v1544_v6 }
 0x1c8   : > { %v3593_v14 = vpop.f32.mrf.mxu2 }
 0x1c9   : > { %v3580_v1 = vpop.f32.mrf.mxu1  ;;  %v3595_v16 = vpop.f32.mrf.mxu3  ;;  %v1447_v59 = vadd.f32 %v3593_v14, %v3578_v51 }
 0x1ca   : > { %v3597_v10 = vpop.f32.mrf.mxu0 }
 0x1cb   : > { %v1545_v39 = vadd.f32 %v3595_v16, %v1447_v59 }
 0x1cc   : > { %2633 = vmatmul.msk.bf16.gmra.mxu1 %vm1246_vm0, %v2030_v37 }
 0x1cd   : > { %v1639_v41 = vadd.f32 %v3597_v10, %v1545_v39 }
 0x1d0   : > { %v3599_v24 = vpop.f32.mrf.mxu2 }
 0x1d1   : > { %v3583_v47 = vpop.f32.mrf.mxu1  ;;  %v3601_v52 = vpop.f32.mrf.mxu3  ;;  %v1450_v51 = vadd.f32 %v3599_v24, %v3580_v1 }
 0x1d2   : > { %v3603_v26 = vpop.f32.mrf.mxu0 }
 0x1d8   : > { %v3605_v27 = vpop.f32.mrf.mxu2 }
 0x1d9   : > { %v1708_v62 = vpop.f32.mrf.mxu1  ;;  %v3609_v31 = vpop.f32.mrf.mxu3  ;;  %v1452_v1 = vadd.f32 %v3605_v27, %v3583_v47 }
 0x1da   : > { %v3611_v38 = vpop.f32.mrf.mxu0  ;;  %v1728_v11 = vadd.f32 %v1708_v62, %v1634_v35 }
 0x1e0   : > { %v1802_v4 = vpop.f32.mrf.mxu2 }
 0x1e1   : > { %v1710_v15 = vpop.f32.mrf.mxu1  ;;  %v1897_v3 = vpop.f32.mrf.mxu3  ;;  %v1822_v25 = vadd.f32 %v1802_v4, %v1728_v11 }
 0x1e2   : > { %v1991_v32 = vpop.f32.mrf.mxu0  ;;  %v1729_v18 = vadd.f32 %v1710_v15, %v1635_v8 }
 0x1e3   : > { %v1917_v9 = vadd.f32 %v1897_v3, %v1822_v25 }
 0x1e5   : > { %v2011_v44 = vadd.f32 %v1991_v32, %v1917_v9 }
 0x1e8   : > { %v1804_v40 = vpop.f32.mrf.mxu2 }
 0x1e9   : > { %v1713_v17 = vpop.f32.mrf.mxu1  ;;  %v1899_v49 = vpop.f32.mrf.mxu3  ;;  %v1823_v50 = vadd.f32 %v1804_v40, %v1729_v18  ;;  %v1546_v18 = vadd.f32 %v3601_v52, %v1450_v51  ;;  %v1547_v52 = vadd.f32 %v3609_v31, %v1452_v1 }
 0x1ea   : > { %v1993_v33 = vpop.f32.mrf.mxu0  ;;  %v1730_v48 = vadd.f32 %v1713_v17, %v1636_v55 }
 0x1eb   : > { %v1918_v43 = vadd.f32 %v1899_v49, %v1823_v50 }
 0x1ed   : > { %v2012_v63 = vadd.f32 %v1993_v33, %v1918_v43 }
 0x1f0   : > { %v1807_v0 = vpop.f32.mrf.mxu2 }
 0x1f1   : > { %v1715_v36 = vpop.f32.mrf.mxu1  ;;  %v1902_v53 = vpop.f32.mrf.mxu3  ;;  %v1824_v37 = vadd.f32 %v1807_v0, %v1730_v48 }
 0x1f2   : > { %v1996_v12 = vpop.f32.mrf.mxu0  ;;  %v1731_v28 = vadd.f32 %v1715_v36, %v1637_v2 }
 0x1f3   : > { %v1919_v4 = vadd.f32 %v1902_v53, %v1824_v37 }
 0x1f5   : > { %v2013_v32 = vadd.f32 %v1996_v12, %v1919_v4 }
 0x1f8   : > { %v1809_v60 = vpop.f32.mrf.mxu2 }
 0x1f9   : > { %v3607_v30 = vpop.f32.mrf.mxu1  ;;  %v1904_v7 = vpop.f32.mrf.mxu3  ;;  %v1825_v40 = vadd.f32 %v1809_v60, %v1731_v28 }
 0x1fa   : > { %v1998_v3 = vpop.f32.mrf.mxu0  ;;  %v1732_v49 = vadd.f32 %v3607_v30, %v1638_v22 }
 0x1fb   : > { %v1920_v58 = vadd.f32 %v1904_v7, %v1825_v40 }
 0x1fd   : > { %v2014_v20 = vadd.f32 %v1998_v3, %v1920_v58 }
 0x200   : > { %v1812_v46 = vpop.f32.mrf.mxu2 }
 0x201   : > { %v3613_v21 = vpop.f32.mrf.mxu1  ;;  %v1907_v36 = vpop.f32.mrf.mxu3  ;;  %v1826_v25 = vadd.f32 %v1812_v46, %v1732_v49 }
 0x202   : > { %v2001_v33 = vpop.f32.mrf.mxu0  ;;  %v1733_v30 = vadd.f32 %v3613_v21, %v1639_v41 }
 0x203   : > { %v1921_v14 = vadd.f32 %v1907_v36, %v1826_v25 }
 0x205   : > { %v2015_v34 = vadd.f32 %v2001_v33, %v1921_v14 }
 0x208   : > { %v1814_v0 = vpop.f32.mrf.mxu2 }
 0x209   : > { %v3615_v29 = vpop.f32.mrf.mxu1  ;;  %v1909_v16 = vpop.f32.mrf.mxu3 }
 0x210   : > { %v1817_v10 = vpop.f32.mrf.mxu2 }
 0x211   : > { %v3617_v5 = vpop.f32.mrf.mxu1  ;;  %v1912_v12 = vpop.f32.mrf.mxu3 }
 0x218   : > { %v1819_v61 = vpop.f32.mrf.mxu2 }
 0x219   : > { %v2085_v54 = vpop.f32.mrf.mxu1 }
 0x21a   : > { %v2105_v56 = vadd.f32 %v2085_v54, %v2011_v44  ;;  %v1827_v44 = vadd.f32 %v1814_v0, %v1733_v30  ;;  %v2003_v54 = vpop.f32.mrf.mxu0 }
 0x21c   : > { %v2117_v45 = vadd.f32 %v3625_v42, %v2105_v56  ;;  %v1640_v56 = vadd.f32 %v3603_v26, %v1546_v18  ;;  %v1922_v24 = vadd.f32 %v1909_v16, %v1827_v44  ;;  %v1641_v26 = vadd.f32 %v3611_v38, %v1547_v52 }
 0x21e   : > { %2125 = vst.msk [vmem:[%s3629_s8] sm:$0xff] %vm1246_vm0, %v2117_v45  ;;  %v1734_v55 = vadd.f32 %v3615_v29, %v1640_v56  ;;  %v2016_v23 = vadd.f32 %v2003_v54, %v1922_v24  ;;  %v1735_v29 = vadd.f32 %v3617_v5, %v1641_v26 }
 0x220   : > { %v1828_v43 = vadd.f32 %v1817_v10, %v1734_v55 }
 0x221   : > { %v2087_v62 = vpop.f32.mrf.mxu1 }
 0x222   : > { %v2106_v15 = vadd.f32 %v2087_v62, %v2012_v63  ;;  %v1923_v47 = vadd.f32 %v1912_v12, %v1828_v43  ;;  %v2006_v48 = vpop.f32.mrf.mxu0  ;;  %v1829_v63 = vadd.f32 %v1819_v61, %v1735_v29 }
 0x224   : > { %v2118_v17 = vadd.f32 %v3625_v42, %v2106_v15  ;;  %v2017_v31 = vadd.f32 %v2006_v48, %v1923_v47  ;;  %v1914_v15 = vpop.f32.mrf.mxu3 }
 0x225   : > { %v1924_v38 = vadd.f32 %v1914_v15, %v1829_v63 }
 0x226   : > { %2126 = vst.msk [vmem:[%s3629_s8 + $0x8] sm:$0xff] %vm1246_vm0, %v2118_v17 }
 0x229   : > { %v2090_v35 = vpop.f32.mrf.mxu1 }
 0x22a   : > { %v2107_v57 = vadd.f32 %v2090_v35, %v2013_v32  ;;  %v2008_v5 = vpop.f32.mrf.mxu0 }
 0x22b   : > { %v2018_v2 = vadd.f32 %v2008_v5, %v1924_v38 }
 0x22c   : > { %v2119_v11 = vadd.f32 %v3625_v42, %v2107_v57 }
 0x22e   : > { %2127 = vst.msk [vmem:[%s3629_s8 + $0x10] sm:$0xff] %vm1246_vm0, %v2119_v11 }
 0x231   : > { %v2092_v8 = vpop.f32.mrf.mxu1 }
 0x232   : > { %v2108_v13 = vadd.f32 %v2092_v8, %v2014_v20 }
 0x234   : > { %v2120_v9 = vadd.f32 %v3625_v42, %v2108_v13 }
 0x236   : > { %2128 = vst.msk [vmem:[%s3629_s8 + $0x18] sm:$0xff] %vm1246_vm0, %v2120_v9 }
 0x239   : > { %v2095_v50 = vpop.f32.mrf.mxu1 }
 0x23a   : > { %v2109_v53 = vadd.f32 %v2095_v50, %v2015_v34 }
 0x23c   : > { %v2121_v21 = vadd.f32 %v3625_v42, %v2109_v53 }
 0x23e   : > { %2129 = vst.msk [vmem:[%s3629_s8 + $0x20] sm:$0xff] %vm1246_vm0, %v2121_v21 }
 0x241   : > { %v2097_v45 = vpop.f32.mrf.mxu1 }
 0x242   : > { %v2110_v60 = vadd.f32 %v2097_v45, %v2016_v23 }
 0x244   : > { %v2122_v27 = vadd.f32 %v3625_v42, %v2110_v60 }
 0x246   : > { %2130 = vst.msk [vmem:[%s3629_s8 + $0x28] sm:$0xff] %vm1246_vm0, %v2122_v27 }
 0x249   : > { %v2100_v37 = vpop.f32.mrf.mxu1 }
 0x24a   : > { %v2111_v62 = vadd.f32 %v2100_v37, %v2017_v31 }
 0x24c   : > { %v2123_v7 = vadd.f32 %v3625_v42, %v2111_v62 }
 0x24e   : > { %2131 = vst.msk [vmem:[%s3629_s8 + $0x30] sm:$0xff] %vm1246_vm0, %v2123_v7 }
 0x251   : > { %v2102_v19 = vpop.f32.mrf.mxu1 }
 0x252   : > { %v2112_v4 = vadd.f32 %v2102_v19, %v2018_v2 }
 0x254   : > { %v2124_v17 = vadd.f32 %v3625_v42, %v2112_v4 }
 0x256   : > { %2132 = vst.msk [vmem:[%s3629_s8 + $0x38] sm:$0xff] %vm1246_vm0, %v2124_v17 }
 0x257   : > { %2772 = shalt.err (!%p2769_p3)
}
 0x258   : > { %s2810_s21 = smov 128   ;;  %s2811_s8 = smov 8  }
 0x259   : > { %2699 = dma.vmem_to_hbm [thread:$0]  (%p2890_p5), %s2147_s15, 1024, %s2149_s16, %s2134_s28, %s2810_s21, %s2810_s21, %s2811_s8  }
 0x25a PF: > { %p2705_p4 = scmp.ge.s32.totalorder %s2807_s27, 2  ;;  %s2163_s13 = sand.u32 1, %s2795_s24  }
 0x25b   : > { %s2164_s14 = scalar_lea.sflag [#allocation4], %s2163_s13 }
 0x25c   : > { %p2702_p7 = pnand %p2705_p4, %p2894_p6 }
 0x25e   : > { %p2703_p8 = pneg %p2702_p7 }
 0x260   : > { %2790 = dma.done.wait (%p2703_p8), %s2164_s14, 1024  }
 0x261   : > { %2792 = vsyncadd (%p2703_p8), %s2164_s14, 4294966272  ;;  %p17_p9 = scmp.ge.s32.totalorder %s2877_s30, 4   ;;  %s3719_s24 = smov %s2799_s25 }
 0x262   : > { %s3720_s25 = smov %s2803_s26  ;;  %s3721_s26 = smov %s2888_s10 }
 0x263   : > { %s3722_s27 = smov %s2877_s30  ;;  %19 = sbr.rel (!%p17_p9) target bundleno = 3 (0x3), region = 105 }
 0x268   :  { %2170 = vsyncpa [#allocation4], 1 }
 0x269   :  { %2172 = vsyncpa [#allocation4 + $0x1], 1 }

</bundles_post_ra>
